<compile_context>
chip_gen: v7x
topology: tpu7x:2x2x1
jax: 0.10.0
libtpu: 0.0.40
codegen_flags: <defaults>
</compile_context>

<pallas_src>
import functools

import jax
import jax.numpy as jnp
from jax.experimental import pallas as pl
from jax.experimental.pallas import tpu as pltpu

_BN_EPS = 1e-5


# ----------------------------- Pallas kernel --------------------------------

def _dense_layer_kernel(*refs, H, W, in_C, mid_C, out_C, k):
    """Whole DenseLayer forward for one batch element (channels-first).

    refs = (x, mask, w_down, b_down, w_dense[0..k-1], b_dense[0..k-1],
            w_fuse, b_fuse, out, fbuf_scratch, patch_scratch)

    fbuf is (C_total, S) bf16 where S flattens the zero-padded (H+2, W+2)
    image (+2 lanes of tap overrun).  Channel layout
        [ down | f1 | ... | f_{k-1} | x | f_k ]
    so each dense step reads a contiguous channel prefix and the fuse conv
    reads the contiguous [x, f_k] block (matching torch.cat order).
    """
    Wp = W + 2
    L = H * Wp                       # "slab": padded rows 1..H, all Wp columns
    S = (H + 2) * Wp + 2             # flat padded-space length (+2 tap overrun)

    x_ref, mask_ref, w_down_ref, b_down_ref = refs[:4]
    rest = refs[4:]
    w_dense = rest[:k]
    b_dense = rest[k:2 * k]
    w_fuse_ref = rest[2 * k]
    b_fuse_ref = rest[2 * k + 1]
    o_ref = rest[2 * k + 2]
    fbuf = rest[2 * k + 3]
    patch = rest[2 * k + 4]

    x_off = k * mid_C                # channel offset of x inside fbuf
    fk_off = x_off + in_C            # channel offset of f_k inside fbuf
    c_total = fk_off + mid_C

    slab = pl.ds(Wp + 1, L)          # interior rows' flat window

    # Keep the never-rewritten halo regions (top pad row / bottom pad row) of
    # the persistent scratch at zero.  Doing it per step (2 x (C_total, 19)
    # elements) is trivial and keeps every grid step self-contained, so the
    # batch axis can be scheduled "parallel" across TensorCores.
    zero_halo = jnp.zeros((c_total, Wp + 1), dtype=fbuf.dtype)
    fbuf[:, 0:Wp + 1] = zero_halo
    fbuf[:, S - (Wp + 1):S] = zero_halo

    mask = mask_ref[...]             # (1, L) f32: 1 at interior cols, else 0

    # x arrives already in slab layout (two zero columns appended per row) ->
    # one contiguous lane-dense store into the feature buffer.
    x = x_ref[0]                     # (in_C, L) bf16
    fbuf[x_off:fk_off, slab] = x

    # ---- down: 1x1 conv + bias (plain Conv2d: no BN, no ReLU) ----
    down = jnp.dot(w_down_ref[...], x, preferred_element_type=jnp.float32)
    down = (down + b_down_ref[...]) * mask
    fbuf[0:mid_C, slab] = down.astype(fbuf.dtype)

    def conv3x3(w_ref, cin, ch_lo):
        # im2col: 9 static lane-offset slices of the flattened padded buffer,
        # stacked along the contraction axis -> ONE wide-K MXU dot.
        for o in range(9):
            ky, kx = divmod(o, 3)
            patch[o * cin:(o + 1) * cin, :] = fbuf[ch_lo:ch_lo + cin,
                                                   pl.ds(ky * Wp + kx, L)]
        return jnp.dot(w_ref[...], patch[0:9 * cin, :],
                       preferred_element_type=jnp.float32)

    # ---- k dense BasicConv2d steps: 3x3 conv (BN folded) + bias + ReLU ----
    for i in range(1, k + 1):
        cin = i * mid_C              # contiguous prefix [down, f1 .. f_{i-1}]
        acc = conv3x3(w_dense[i - 1], cin, 0)
        feat = jnp.maximum(acc + b_dense[i - 1][...], 0.0) * mask
        off = i * mid_C if i < k else fk_off
        fbuf[off:off + mid_C, slab] = feat.astype(fbuf.dtype)

    # ---- fuse: BasicConv2d over the contiguous [x, f_k] block ----
    acc = conv3x3(w_fuse_ref, in_C + mid_C, x_off)
    out = jnp.maximum(acc + b_fuse_ref[...], 0.0)      # (out_C, L), lane-dense
    o_ref[0] = out.astype(o_ref.dtype)


# ------------------------------ wrapper (JAX) --------------------------------

def prepare_params(params):
    """One-time parameter prep: fold BN into weights, reorder input channels to
    the in-kernel buffer layout, lay conv weights out as (Cout, 9*Cin) bf16."""
    down_w = params["down_w"]                         # (mid_C, in_C, 1, 1)
    mid_C, in_C = down_w.shape[0], down_w.shape[1]

    def fold(p):
        scale = p["gamma"] / jnp.sqrt(p["var"] + _BN_EPS)
        bias = p["beta"] - p["mean"] * scale
        return scale, bias

    kp = dict(
        w_down=down_w.reshape(mid_C, in_C).astype(jnp.bfloat16),
        b_down=params["down_b"].reshape(mid_C, 1).astype(jnp.float32),
        w_dense=[], b_dense=[],
    )

    for i, p in enumerate(params["dense"], start=1):
        w = p["w"]                                    # (mid_C, i*mid_C, 3, 3)
        # torch input-channel order is [f1..f_{i-1}, down]; buffer prefix order
        # is [down, f1..f_{i-1}]  ->  move the trailing mid_C channels first.
        w = jnp.roll(w, mid_C, axis=1)
        scale, bias = fold(p)
        w = w * scale[:, None, None, None]            # fold BN scale
        w = jnp.transpose(w, (0, 2, 3, 1)).reshape(mid_C, 9 * i * mid_C)
        kp["w_dense"].append(w.astype(jnp.bfloat16))
        kp["b_dense"].append(bias.reshape(mid_C, 1).astype(jnp.float32))

    wf = params["fuse"]["w"]                          # (out_C, in_C+mid_C, 3, 3)
    out_C = wf.shape[0]
    scale, bias = fold(params["fuse"])
    wf = wf * scale[:, None, None, None]
    kp["w_fuse"] = jnp.transpose(wf, (0, 2, 3, 1)).reshape(
        out_C, 9 * (in_C + mid_C)).astype(jnp.bfloat16)
    kp["b_fuse"] = bias.reshape(out_C, 1).astype(jnp.float32)
    return kp


def dense_layer_forward(x_nchw, kp):
    """DenseLayer.forward (NCHW in, NCHW out) via one fused Pallas kernel."""
    N, in_C, H, W = x_nchw.shape
    k = len(kp["w_dense"])
    mid_C = kp["w_down"].shape[0]
    out_C = kp["w_fuse"].shape[0]
    Wp = W + 2
    L = H * Wp
    S = (H + 2) * Wp + 2
    c_total = (k + 1) * mid_C + in_C                  # [down|f1..f_{k-1}|x|f_k]
    cin_max = max(k * mid_C, in_C + mid_C)

    # x: NCHW -> slab layout (N, in_C, H*(W+2)): append 2 zero cols per row.
    # (Cheap pad + free reshape; no NCHW->NHWC transpose.)
    x_slab = jnp.pad(x_nchw, ((0, 0), (0, 0), (0, 0), (0, 2)))
    x_slab = x_slab.reshape(N, in_C, L).astype(jnp.bfloat16)

    # 0/1 interior-column mask over the slab (kills garbage at pad columns).
    col = jnp.arange(L, dtype=jnp.int32) % Wp
    mask = (col < W).astype(jnp.float32).reshape(1, L)

    def full(a):
        rank = a.ndim
        return pl.BlockSpec(a.shape, lambda n, _r=rank: (0,) * _r)

    in_specs = [pl.BlockSpec((1, in_C, L), lambda n: (n, 0, 0)),
                full(mask), full(kp["w_down"]), full(kp["b_down"])]
    in_specs += [full(w) for w in kp["w_dense"]]
    in_specs += [full(b) for b in kp["b_dense"]]
    in_specs += [full(kp["w_fuse"]), full(kp["b_fuse"])]

    kernel = functools.partial(_dense_layer_kernel, H=H, W=W, in_C=in_C,
                               mid_C=mid_C, out_C=out_C, k=k)

    # TODO(synk): for large H, W add a spatial row-strip grid axis (1-row halo)
    # so the scratch fits v7x's 64 MiB VMEM; unnecessary at these shapes.
    out = pl.pallas_call(
        kernel,
        out_shape=jax.ShapeDtypeStruct((N, out_C, L), jnp.float32),
        grid_spec=pltpu.PrefetchScalarGridSpec(
            num_scalar_prefetch=0,
            grid=(N,),
            in_specs=in_specs,
            out_specs=pl.BlockSpec((1, out_C, L), lambda n: (n, 0, 0)),
            scratch_shapes=[pltpu.VMEM((c_total, S), jnp.bfloat16),
                            pltpu.VMEM((9 * cin_max, L), jnp.bfloat16)],
        ),
        compiler_params=pltpu.CompilerParams(
            dimension_semantics=("parallel",)),
    )(x_slab, mask, kp["w_down"], kp["b_down"],
      *kp["w_dense"], *kp["b_dense"], kp["w_fuse"], kp["b_fuse"])

    # (out_C, H*(W+2)) slab -> NCHW: drop the 2 pad columns per row.
    return out.reshape(N, out_C, H, Wp)[:, :, :, :W]


# ------------------------- pure-JAX reference (check) ------------------------

def _ref_forward(x_nchw, params):
    def conv(x, w, pad):
        return jax.lax.conv_general_dilated(
            x, w, (1, 1), [(pad, pad), (pad, pad)],
            dimension_numbers=("NCHW", "OIHW", "NCHW"),
            precision=jax.lax.Precision.HIGHEST)

    def bconv(x, p):
        y = conv(x, p["w"], 1)
        scale = p["gamma"] / jnp.sqrt(p["var"] + _BN_EPS)
        bias = p["beta"] - p["mean"] * scale
        y = y * scale[None, :, None, None] + bias[None, :, None, None]
        return jnp.maximum(y, 0.0)

    down = conv(x_nchw, params["down_w"], 0) + params["down_b"][None, :, None, None]
    out_feats = []
    feats = down
    for p in params["dense"]:
        inp = jnp.concatenate(out_feats + [down], axis=1)
        feats = bconv(inp, p)
        out_feats.append(feats)
    fused = jnp.concatenate([x_nchw, feats], axis=1)
    return bconv(fused, params["fuse"])


# ------------------------------ param init -----------------------------------

def init_params(key, in_C, out_C, down_factor=4, k=4):
    mid_C = out_C // down_factor
    keys = iter(jax.random.split(key, 64))

    def bn_params(c):
        return dict(
            gamma=jax.random.uniform(next(keys), (c,), jnp.float32, 0.5, 1.5),
            beta=0.1 * jax.random.normal(next(keys), (c,), jnp.float32),
            mean=0.1 * jax.random.normal(next(keys), (c,), jnp.float32),
            var=jax.random.uniform(next(keys), (c,), jnp.float32, 0.5, 1.5),
        )

    params = dict(
        down_w=0.1 * jax.random.normal(next(keys), (mid_C, in_C, 1, 1), jnp.float32),
        down_b=0.1 * jax.random.normal(next(keys), (mid_C,), jnp.float32),
        dense=[],
    )
    for i in range(1, k + 1):
        p = dict(w=0.1 * jax.random.normal(next(keys), (mid_C, mid_C * i, 3, 3),
                                           jnp.float32))
        p.update(bn_params(mid_C))
        params["dense"].append(p)
    fuse = dict(w=0.1 * jax.random.normal(next(keys), (out_C, in_C + mid_C, 3, 3),
                                          jnp.float32))
    fuse.update(bn_params(out_C))
    params["fuse"] = fuse
    return params


# ---------------------------------- main --------------------------------------

if __name__ == "__main__":
    in_C, out_C, down_factor, k = 8, 16, 4, 4
    N, H, W = 2, 16, 16

    root = jax.random.PRNGKey(0)
    kx, kparam = jax.random.split(root)
    x = jax.random.normal(kx, (N, in_C, H, W), jnp.float32)
    params = init_params(kparam, in_C, out_C, down_factor, k)

    kernel_params = prepare_params(params)     # one-time prep (BN fold, reorder)
    fwd = jax.jit(dense_layer_forward)
    out = jax.block_until_ready(fwd(x, kernel_params))
    assert out.shape == (N, out_C, H, W), out.shape

    ref = jax.block_until_ready(_ref_forward(x, params))
    # Kernel stores features/weights in bf16 and uses bf16 MXU passes with f32
    # accumulation; reference is HIGHEST-precision f32, hence the tolerance.
    err = float(jnp.max(jnp.abs(out - ref)))
    tol = 5e-2 * max(1.0, float(jnp.max(jnp.abs(ref))))
    if not err < tol:
        raise AssertionError(f"mismatch vs reference, max abs err = {err}")

    print("KERNEL_OK")
</pallas_src>

<mosaic_0001>
module attributes {stable_mosaic.version = 11 : i64} {
  func.func @_dense_layer_kernel(%arg0: i32, %arg1: memref<1x8x288xbf16, #tpu.memory_space<vmem>>, %arg2: memref<1x288xf32, #tpu.memory_space<vmem>>, %arg3: memref<4x8xbf16, #tpu.memory_space<vmem>>, %arg4: memref<4x1xf32, #tpu.memory_space<vmem>>, %arg5: memref<4x36xbf16, #tpu.memory_space<vmem>>, %arg6: memref<4x72xbf16, #tpu.memory_space<vmem>>, %arg7: memref<4x108xbf16, #tpu.memory_space<vmem>>, %arg8: memref<4x144xbf16, #tpu.memory_space<vmem>>, %arg9: memref<4x1xf32, #tpu.memory_space<vmem>>, %arg10: memref<4x1xf32, #tpu.memory_space<vmem>>, %arg11: memref<4x1xf32, #tpu.memory_space<vmem>>, %arg12: memref<4x1xf32, #tpu.memory_space<vmem>>, %arg13: memref<16x108xbf16, #tpu.memory_space<vmem>>, %arg14: memref<16x1xf32, #tpu.memory_space<vmem>>, %arg15: memref<1x16x288xf32, #tpu.memory_space<vmem>>, %arg16: memref<28x326xbf16, #tpu.memory_space<vmem>>, %arg17: memref<144x288xbf16, #tpu.memory_space<vmem>>) attributes {dimension_semantics = [#tpu.dimension_semantics<parallel>], iteration_bounds = array<i64: 2>, scalar_prefetch = 0 : i64, scratch_operands = 2 : i64, tpu.core_type = #tpu.core_type<tc>, window_params = [{transform_indices = @transform_0, window_bounds = array<i64: 1, 8, 288>}, {pipeline_mode = #tpu.pipeline_mode<synchronous>, transform_indices = @transform_1, window_bounds = array<i64: 1, 288>}, {pipeline_mode = #tpu.pipeline_mode<synchronous>, transform_indices = @transform_2, window_bounds = array<i64: 4, 8>}, {pipeline_mode = #tpu.pipeline_mode<synchronous>, transform_indices = @transform_3, window_bounds = array<i64: 4, 1>}, {pipeline_mode = #tpu.pipeline_mode<synchronous>, transform_indices = @transform_4, window_bounds = array<i64: 4, 36>}, {pipeline_mode = #tpu.pipeline_mode<synchronous>, transform_indices = @transform_5, window_bounds = array<i64: 4, 72>}, {pipeline_mode = #tpu.pipeline_mode<synchronous>, transform_indices = @transform_6, window_bounds = array<i64: 4, 108>}, {pipeline_mode = #tpu.pipeline_mode<synchronous>, transform_indices = @transform_7, window_bounds = array<i64: 4, 144>}, {pipeline_mode = #tpu.pipeline_mode<synchronous>, transform_indices = @transform_8, window_bounds = array<i64: 4, 1>}, {pipeline_mode = #tpu.pipeline_mode<synchronous>, transform_indices = @transform_9, window_bounds = array<i64: 4, 1>}, {pipeline_mode = #tpu.pipeline_mode<synchronous>, transform_indices = @transform_10, window_bounds = array<i64: 4, 1>}, {pipeline_mode = #tpu.pipeline_mode<synchronous>, transform_indices = @transform_11, window_bounds = array<i64: 4, 1>}, {pipeline_mode = #tpu.pipeline_mode<synchronous>, transform_indices = @transform_12, window_bounds = array<i64: 16, 108>}, {pipeline_mode = #tpu.pipeline_mode<synchronous>, transform_indices = @transform_13, window_bounds = array<i64: 16, 1>}, {transform_indices = @transform_14, window_bounds = array<i64: 1, 16, 288>}]} {
    %cst = arith.constant 0.000000e+00 : bf16
    %0 = vector.broadcast %cst : bf16 to vector<28x19xbf16>
    %c0 = arith.constant 0 : index
    %c0_0 = arith.constant 0 : index
    %1 = vector.load %arg16[%c0, %c0_0] : memref<28x326xbf16, #tpu.memory_space<vmem>>, vector<28x19xbf16>
    tpu.vector_store %arg16[%c0, %c0_0], %0 {strides = array<i32>} : memref<28x326xbf16, #tpu.memory_space<vmem>>, vector<28x19xbf16>,
    %c0_1 = arith.constant 0 : index
    %c307 = arith.constant 307 : index
    %2 = vector.load %arg16[%c0_1, %c307] : memref<28x326xbf16, #tpu.memory_space<vmem>>, vector<28x19xbf16>
    tpu.vector_store %arg16[%c0_1, %c307], %0 {strides = array<i32>} : memref<28x326xbf16, #tpu.memory_space<vmem>>, vector<28x19xbf16>,
    %c0_2 = arith.constant 0 : index
    %c0_3 = arith.constant 0 : index
    %3 = vector.load %arg2[%c0_2, %c0_3] : memref<1x288xf32, #tpu.memory_space<vmem>>, vector<1x288xf32>
    %c0_4 = arith.constant 0 : index
    %c0_5 = arith.constant 0 : index
    %c0_6 = arith.constant 0 : index
    %4 = vector.load %arg1[%c0_4, %c0_5, %c0_6] : memref<1x8x288xbf16, #tpu.memory_space<vmem>>, vector<1x8x288xbf16>
    %5 = vector.shape_cast %4 : vector<1x8x288xbf16> to vector<8x288xbf16>
    %c16 = arith.constant 16 : index
    %c19 = arith.constant 19 : index
    %6 = vector.load %arg16[%c16, %c19] : memref<28x326xbf16, #tpu.memory_space<vmem>>, vector<8x288xbf16>
    tpu.vector_store %arg16[%c16, %c19], %5 {strides = array<i32>} : memref<28x326xbf16, #tpu.memory_space<vmem>>, vector<8x288xbf16>,
    %c0_7 = arith.constant 0 : index
    %c0_8 = arith.constant 0 : index
    %7 = vector.load %arg3[%c0_7, %c0_8] : memref<4x8xbf16, #tpu.memory_space<vmem>>, vector<4x8xbf16>
    %cst_9 = arith.constant dense<0.000000e+00> : vector<4x288xf32>
    %8 = tpu.matmul %7, %5, %cst_9 {dimension_numbers = #tpu.dot_dimension_numbers<[1], [0], [0], [1], [0, 0, 1, 1], [], []>} : vector<4x8xbf16>, vector<8x288xbf16>, vector<4x288xf32> -> vector<4x288xf32>
    %c0_10 = arith.constant 0 : index
    %c0_11 = arith.constant 0 : index
    %9 = vector.load %arg4[%c0_10, %c0_11] : memref<4x1xf32, #tpu.memory_space<vmem>>, vector<4x1xf32>
    %10 = vector.broadcast %9 : vector<4x1xf32> to vector<4x288xf32>
    %11 = arith.addf %8, %10 : vector<4x288xf32>
    %12 = vector.broadcast %3 : vector<1x288xf32> to vector<4x288xf32>
    %13 = arith.mulf %11, %12 : vector<4x288xf32>
    %14 = arith.truncf %13 : vector<4x288xf32> to vector<4x288xbf16>
    %c0_12 = arith.constant 0 : index
    %c19_13 = arith.constant 19 : index
    %15 = vector.load %arg16[%c0_12, %c19_13] : memref<28x326xbf16, #tpu.memory_space<vmem>>, vector<4x288xbf16>
    tpu.vector_store %arg16[%c0_12, %c19_13], %14 {strides = array<i32>} : memref<28x326xbf16, #tpu.memory_space<vmem>>, vector<4x288xbf16>,
    %c0_14 = arith.constant 0 : index
    %c0_15 = arith.constant 0 : index
    %16 = vector.load %arg16[%c0_14, %c0_15] : memref<28x326xbf16, #tpu.memory_space<vmem>>, vector<4x288xbf16>
    %c0_16 = arith.constant 0 : index
    %c0_17 = arith.constant 0 : index
    %17 = vector.load %arg17[%c0_16, %c0_17] : memref<144x288xbf16, #tpu.memory_space<vmem>>, vector<4x288xbf16>
    tpu.vector_store %arg17[%c0_16, %c0_17], %16 {strides = array<i32>} : memref<144x288xbf16, #tpu.memory_space<vmem>>, vector<4x288xbf16>,
    %c0_18 = arith.constant 0 : index
    %c1 = arith.constant 1 : index
    %18 = vector.load %arg16[%c0_18, %c1] : memref<28x326xbf16, #tpu.memory_space<vmem>>, vector<4x288xbf16>
    %c4 = arith.constant 4 : index
    %c0_19 = arith.constant 0 : index
    %19 = vector.load %arg17[%c4, %c0_19] : memref<144x288xbf16, #tpu.memory_space<vmem>>, vector<4x288xbf16>
    tpu.vector_store %arg17[%c4, %c0_19], %18 {strides = array<i32>} : memref<144x288xbf16, #tpu.memory_space<vmem>>, vector<4x288xbf16>,
    %c0_20 = arith.constant 0 : index
    %c2 = arith.constant 2 : index
    %20 = vector.load %arg16[%c0_20, %c2] : memref<28x326xbf16, #tpu.memory_space<vmem>>, vector<4x288xbf16>
    %c8 = arith.constant 8 : index
    %c0_21 = arith.constant 0 : index
    %21 = vector.load %arg17[%c8, %c0_21] : memref<144x288xbf16, #tpu.memory_space<vmem>>, vector<4x288xbf16>
    tpu.vector_store %arg17[%c8, %c0_21], %20 {strides = array<i32>} : memref<144x288xbf16, #tpu.memory_space<vmem>>, vector<4x288xbf16>,
    %c0_22 = arith.constant 0 : index
    %c18 = arith.constant 18 : index
    %22 = vector.load %arg16[%c0_22, %c18] : memref<28x326xbf16, #tpu.memory_space<vmem>>, vector<4x288xbf16>
    %c12 = arith.constant 12 : index
    %c0_23 = arith.constant 0 : index
    %23 = vector.load %arg17[%c12, %c0_23] : memref<144x288xbf16, #tpu.memory_space<vmem>>, vector<4x288xbf16>
    tpu.vector_store %arg17[%c12, %c0_23], %22 {strides = array<i32>} : memref<144x288xbf16, #tpu.memory_space<vmem>>, vector<4x288xbf16>,
    %c0_24 = arith.constant 0 : index
    %c19_25 = arith.constant 19 : index
    %24 = vector.load %arg16[%c0_24, %c19_25] : memref<28x326xbf16, #tpu.memory_space<vmem>>, vector<4x288xbf16>
    %c16_26 = arith.constant 16 : index
    %c0_27 = arith.constant 0 : index
    %25 = vector.load %arg17[%c16_26, %c0_27] : memref<144x288xbf16, #tpu.memory_space<vmem>>, vector<4x288xbf16>
    tpu.vector_store %arg17[%c16_26, %c0_27], %24 {strides = array<i32>} : memref<144x288xbf16, #tpu.memory_space<vmem>>, vector<4x288xbf16>,
    %c0_28 = arith.constant 0 : index
    %c20 = arith.constant 20 : index
    %26 = vector.load %arg16[%c0_28, %c20] : memref<28x326xbf16, #tpu.memory_space<vmem>>, vector<4x288xbf16>
    %c20_29 = arith.constant 20 : index
    %c0_30 = arith.constant 0 : index
    %27 = vector.load %arg17[%c20_29, %c0_30] : memref<144x288xbf16, #tpu.memory_space<vmem>>, vector<4x288xbf16>
    tpu.vector_store %arg17[%c20_29, %c0_30], %26 {strides = array<i32>} : memref<144x288xbf16, #tpu.memory_space<vmem>>, vector<4x288xbf16>,
    %c0_31 = arith.constant 0 : index
    %c36 = arith.constant 36 : index
    %28 = vector.load %arg16[%c0_31, %c36] : memref<28x326xbf16, #tpu.memory_space<vmem>>, vector<4x288xbf16>
    %c24 = arith.constant 24 : index
    %c0_32 = arith.constant 0 : index
    %29 = vector.load %arg17[%c24, %c0_32] : memref<144x288xbf16, #tpu.memory_space<vmem>>, vector<4x288xbf16>
    tpu.vector_store %arg17[%c24, %c0_32], %28 {strides = array<i32>} : memref<144x288xbf16, #tpu.memory_space<vmem>>, vector<4x288xbf16>,
    %c0_33 = arith.constant 0 : index
    %c37 = arith.constant 37 : index
    %30 = vector.load %arg16[%c0_33, %c37] : memref<28x326xbf16, #tpu.memory_space<vmem>>, vector<4x288xbf16>
    %c28 = arith.constant 28 : index
    %c0_34 = arith.constant 0 : index
    %31 = vector.load %arg17[%c28, %c0_34] : memref<144x288xbf16, #tpu.memory_space<vmem>>, vector<4x288xbf16>
    tpu.vector_store %arg17[%c28, %c0_34], %30 {strides = array<i32>} : memref<144x288xbf16, #tpu.memory_space<vmem>>, vector<4x288xbf16>,
    %c0_35 = arith.constant 0 : index
    %c38 = arith.constant 38 : index
    %32 = vector.load %arg16[%c0_35, %c38] : memref<28x326xbf16, #tpu.memory_space<vmem>>, vector<4x288xbf16>
    %c32 = arith.constant 32 : index
    %c0_36 = arith.constant 0 : index
    %33 = vector.load %arg17[%c32, %c0_36] : memref<144x288xbf16, #tpu.memory_space<vmem>>, vector<4x288xbf16>
    tpu.vector_store %arg17[%c32, %c0_36], %32 {strides = array<i32>} : memref<144x288xbf16, #tpu.memory_space<vmem>>, vector<4x288xbf16>,
    %c0_37 = arith.constant 0 : index
    %c0_38 = arith.constant 0 : index
    %34 = vector.load %arg5[%c0_37, %c0_38] : memref<4x36xbf16, #tpu.memory_space<vmem>>, vector<4x36xbf16>
    %c0_39 = arith.constant 0 : index
    %c0_40 = arith.constant 0 : index
    %35 = vector.load %arg17[%c0_39, %c0_40] : memref<144x288xbf16, #tpu.memory_space<vmem>>, vector<36x288xbf16>
    %cst_41 = arith.constant dense<0.000000e+00> : vector<4x288xf32>
    %36 = tpu.matmul %34, %35, %cst_41 {dimension_numbers = #tpu.dot_dimension_numbers<[1], [0], [0], [1], [0, 0, 1, 1], [], []>} : vector<4x36xbf16>, vector<36x288xbf16>, vector<4x288xf32> -> vector<4x288xf32>
    %c0_42 = arith.constant 0 : index
    %c0_43 = arith.constant 0 : index
    %37 = vector.load %arg9[%c0_42, %c0_43] : memref<4x1xf32, #tpu.memory_space<vmem>>, vector<4x1xf32>
    %38 = vector.broadcast %37 : vector<4x1xf32> to vector<4x288xf32>
    %39 = arith.addf %36, %38 : vector<4x288xf32>
    %cst_44 = arith.constant 0.000000e+00 : f32
    %40 = vector.broadcast %cst_44 : f32 to vector<4x288xf32>
    %41 = arith.maximumf %39, %40 : vector<4x288xf32>
    %42 = vector.broadcast %3 : vector<1x288xf32> to vector<4x288xf32>
    %43 = arith.mulf %41, %42 : vector<4x288xf32>
    %44 = arith.truncf %43 : vector<4x288xf32> to vector<4x288xbf16>
    %c4_45 = arith.constant 4 : index
    %c19_46 = arith.constant 19 : index
    %45 = vector.load %arg16[%c4_45, %c19_46] : memref<28x326xbf16, #tpu.memory_space<vmem>>, vector<4x288xbf16>
    tpu.vector_store %arg16[%c4_45, %c19_46], %44 {strides = array<i32>} : memref<28x326xbf16, #tpu.memory_space<vmem>>, vector<4x288xbf16>,
    %c0_47 = arith.constant 0 : index
    %c0_48 = arith.constant 0 : index
    %46 = vector.load %arg16[%c0_47, %c0_48] : memref<28x326xbf16, #tpu.memory_space<vmem>>, vector<8x288xbf16>
    %c0_49 = arith.constant 0 : index
    %c0_50 = arith.constant 0 : index
    %47 = vector.load %arg17[%c0_49, %c0_50] : memref<144x288xbf16, #tpu.memory_space<vmem>>, vector<8x288xbf16>
    tpu.vector_store %arg17[%c0_49, %c0_50], %46 {strides = array<i32>} : memref<144x288xbf16, #tpu.memory_space<vmem>>, vector<8x288xbf16>,
    %c0_51 = arith.constant 0 : index
    %c1_52 = arith.constant 1 : index
    %48 = vector.load %arg16[%c0_51, %c1_52] : memref<28x326xbf16, #tpu.memory_space<vmem>>, vector<8x288xbf16>
    %c8_53 = arith.constant 8 : index
    %c0_54 = arith.constant 0 : index
    %49 = vector.load %arg17[%c8_53, %c0_54] : memref<144x288xbf16, #tpu.memory_space<vmem>>, vector<8x288xbf16>
    tpu.vector_store %arg17[%c8_53, %c0_54], %48 {strides = array<i32>} : memref<144x288xbf16, #tpu.memory_space<vmem>>, vector<8x288xbf16>,
    %c0_55 = arith.constant 0 : index
    %c2_56 = arith.constant 2 : index
    %50 = vector.load %arg16[%c0_55, %c2_56] : memref<28x326xbf16, #tpu.memory_space<vmem>>, vector<8x288xbf16>
    %c16_57 = arith.constant 16 : index
    %c0_58 = arith.constant 0 : index
    %51 = vector.load %arg17[%c16_57, %c0_58] : memref<144x288xbf16, #tpu.memory_space<vmem>>, vector<8x288xbf16>
    tpu.vector_store %arg17[%c16_57, %c0_58], %50 {strides = array<i32>} : memref<144x288xbf16, #tpu.memory_space<vmem>>, vector<8x288xbf16>,
    %c0_59 = arith.constant 0 : index
    %c18_60 = arith.constant 18 : index
    %52 = vector.load %arg16[%c0_59, %c18_60] : memref<28x326xbf16, #tpu.memory_space<vmem>>, vector<8x288xbf16>
    %c24_61 = arith.constant 24 : index
    %c0_62 = arith.constant 0 : index
    %53 = vector.load %arg17[%c24_61, %c0_62] : memref<144x288xbf16, #tpu.memory_space<vmem>>, vector<8x288xbf16>
    tpu.vector_store %arg17[%c24_61, %c0_62], %52 {strides = array<i32>} : memref<144x288xbf16, #tpu.memory_space<vmem>>, vector<8x288xbf16>,
    %c0_63 = arith.constant 0 : index
    %c19_64 = arith.constant 19 : index
    %54 = vector.load %arg16[%c0_63, %c19_64] : memref<28x326xbf16, #tpu.memory_space<vmem>>, vector<8x288xbf16>
    %c32_65 = arith.constant 32 : index
    %c0_66 = arith.constant 0 : index
    %55 = vector.load %arg17[%c32_65, %c0_66] : memref<144x288xbf16, #tpu.memory_space<vmem>>, vector<8x288xbf16>
    tpu.vector_store %arg17[%c32_65, %c0_66], %54 {strides = array<i32>} : memref<144x288xbf16, #tpu.memory_space<vmem>>, vector<8x288xbf16>,
    %c0_67 = arith.constant 0 : index
    %c20_68 = arith.constant 20 : index
    %56 = vector.load %arg16[%c0_67, %c20_68] : memref<28x326xbf16, #tpu.memory_space<vmem>>, vector<8x288xbf16>
    %c40 = arith.constant 40 : index
    %c0_69 = arith.constant 0 : index
    %57 = vector.load %arg17[%c40, %c0_69] : memref<144x288xbf16, #tpu.memory_space<vmem>>, vector<8x288xbf16>
    tpu.vector_store %arg17[%c40, %c0_69], %56 {strides = array<i32>} : memref<144x288xbf16, #tpu.memory_space<vmem>>, vector<8x288xbf16>,
    %c0_70 = arith.constant 0 : index
    %c36_71 = arith.constant 36 : index
    %58 = vector.load %arg16[%c0_70, %c36_71] : memref<28x326xbf16, #tpu.memory_space<vmem>>, vector<8x288xbf16>
    %c48 = arith.constant 48 : index
    %c0_72 = arith.constant 0 : index
    %59 = vector.load %arg17[%c48, %c0_72] : memref<144x288xbf16, #tpu.memory_space<vmem>>, vector<8x288xbf16>
    tpu.vector_store %arg17[%c48, %c0_72], %58 {strides = array<i32>} : memref<144x288xbf16, #tpu.memory_space<vmem>>, vector<8x288xbf16>,
    %c0_73 = arith.constant 0 : index
    %c37_74 = arith.constant 37 : index
    %60 = vector.load %arg16[%c0_73, %c37_74] : memref<28x326xbf16, #tpu.memory_space<vmem>>, vector<8x288xbf16>
    %c56 = arith.constant 56 : index
    %c0_75 = arith.constant 0 : index
    %61 = vector.load %arg17[%c56, %c0_75] : memref<144x288xbf16, #tpu.memory_space<vmem>>, vector<8x288xbf16>
    tpu.vector_store %arg17[%c56, %c0_75], %60 {strides = array<i32>} : memref<144x288xbf16, #tpu.memory_space<vmem>>, vector<8x288xbf16>,
    %c0_76 = arith.constant 0 : index
    %c38_77 = arith.constant 38 : index
    %62 = vector.load %arg16[%c0_76, %c38_77] : memref<28x326xbf16, #tpu.memory_space<vmem>>, vector<8x288xbf16>
    %c64 = arith.constant 64 : index
    %c0_78 = arith.constant 0 : index
    %63 = vector.load %arg17[%c64, %c0_78] : memref<144x288xbf16, #tpu.memory_space<vmem>>, vector<8x288xbf16>
    tpu.vector_store %arg17[%c64, %c0_78], %62 {strides = array<i32>} : memref<144x288xbf16, #tpu.memory_space<vmem>>, vector<8x288xbf16>,
    %c0_79 = arith.constant 0 : index
    %c0_80 = arith.constant 0 : index
    %64 = vector.load %arg6[%c0_79, %c0_80] : memref<4x72xbf16, #tpu.memory_space<vmem>>, vector<4x72xbf16>
    %c0_81 = arith.constant 0 : index
    %c0_82 = arith.constant 0 : index
    %65 = vector.load %arg17[%c0_81, %c0_82] : memref<144x288xbf16, #tpu.memory_space<vmem>>, vector<72x288xbf16>
    %cst_83 = arith.constant dense<0.000000e+00> : vector<4x288xf32>
    %66 = tpu.matmul %64, %65, %cst_83 {dimension_numbers = #tpu.dot_dimension_numbers<[1], [0], [0], [1], [0, 0, 1, 1], [], []>} : vector<4x72xbf16>, vector<72x288xbf16>, vector<4x288xf32> -> vector<4x288xf32>
    %c0_84 = arith.constant 0 : index
    %c0_85 = arith.constant 0 : index
    %67 = vector.load %arg10[%c0_84, %c0_85] : memref<4x1xf32, #tpu.memory_space<vmem>>, vector<4x1xf32>
    %68 = vector.broadcast %67 : vector<4x1xf32> to vector<4x288xf32>
    %69 = arith.addf %66, %68 : vector<4x288xf32>
    %cst_86 = arith.constant 0.000000e+00 : f32
    %70 = vector.broadcast %cst_86 : f32 to vector<4x288xf32>
    %71 = arith.maximumf %69, %70 : vector<4x288xf32>
    %72 = vector.broadcast %3 : vector<1x288xf32> to vector<4x288xf32>
    %73 = arith.mulf %71, %72 : vector<4x288xf32>
    %74 = arith.truncf %73 : vector<4x288xf32> to vector<4x288xbf16>
    %c8_87 = arith.constant 8 : index
    %c19_88 = arith.constant 19 : index
    %75 = vector.load %arg16[%c8_87, %c19_88] : memref<28x326xbf16, #tpu.memory_space<vmem>>, vector<4x288xbf16>
    tpu.vector_store %arg16[%c8_87, %c19_88], %74 {strides = array<i32>} : memref<28x326xbf16, #tpu.memory_space<vmem>>, vector<4x288xbf16>,
    %c0_89 = arith.constant 0 : index
    %c0_90 = arith.constant 0 : index
    %76 = vector.load %arg16[%c0_89, %c0_90] : memref<28x326xbf16, #tpu.memory_space<vmem>>, vector<12x288xbf16>
    %c0_91 = arith.constant 0 : index
    %c0_92 = arith.constant 0 : index
    %77 = vector.load %arg17[%c0_91, %c0_92] : memref<144x288xbf16, #tpu.memory_space<vmem>>, vector<12x288xbf16>
    tpu.vector_store %arg17[%c0_91, %c0_92], %76 {strides = array<i32>} : memref<144x288xbf16, #tpu.memory_space<vmem>>, vector<12x288xbf16>,
    %c0_93 = arith.constant 0 : index
    %c1_94 = arith.constant 1 : index
    %78 = vector.load %arg16[%c0_93, %c1_94] : memref<28x326xbf16, #tpu.memory_space<vmem>>, vector<12x288xbf16>
    %c12_95 = arith.constant 12 : index
    %c0_96 = arith.constant 0 : index
    %79 = vector.load %arg17[%c12_95, %c0_96] : memref<144x288xbf16, #tpu.memory_space<vmem>>, vector<12x288xbf16>
    tpu.vector_store %arg17[%c12_95, %c0_96], %78 {strides = array<i32>} : memref<144x288xbf16, #tpu.memory_space<vmem>>, vector<12x288xbf16>,
    %c0_97 = arith.constant 0 : index
    %c2_98 = arith.constant 2 : index
    %80 = vector.load %arg16[%c0_97, %c2_98] : memref<28x326xbf16, #tpu.memory_space<vmem>>, vector<12x288xbf16>
    %c24_99 = arith.constant 24 : index
    %c0_100 = arith.constant 0 : index
    %81 = vector.load %arg17[%c24_99, %c0_100] : memref<144x288xbf16, #tpu.memory_space<vmem>>, vector<12x288xbf16>
    tpu.vector_store %arg17[%c24_99, %c0_100], %80 {strides = array<i32>} : memref<144x288xbf16, #tpu.memory_space<vmem>>, vector<12x288xbf16>,
    %c0_101 = arith.constant 0 : index
    %c18_102 = arith.constant 18 : index
    %82 = vector.load %arg16[%c0_101, %c18_102] : memref<28x326xbf16, #tpu.memory_space<vmem>>, vector<12x288xbf16>
    %c36_103 = arith.constant 36 : index
    %c0_104 = arith.constant 0 : index
    %83 = vector.load %arg17[%c36_103, %c0_104] : memref<144x288xbf16, #tpu.memory_space<vmem>>, vector<12x288xbf16>
    tpu.vector_store %arg17[%c36_103, %c0_104], %82 {strides = array<i32>} : memref<144x288xbf16, #tpu.memory_space<vmem>>, vector<12x288xbf16>,
    %c0_105 = arith.constant 0 : index
    %c19_106 = arith.constant 19 : index
    %84 = vector.load %arg16[%c0_105, %c19_106] : memref<28x326xbf16, #tpu.memory_space<vmem>>, vector<12x288xbf16>
    %c48_107 = arith.constant 48 : index
    %c0_108 = arith.constant 0 : index
    %85 = vector.load %arg17[%c48_107, %c0_108] : memref<144x288xbf16, #tpu.memory_space<vmem>>, vector<12x288xbf16>
    tpu.vector_store %arg17[%c48_107, %c0_108], %84 {strides = array<i32>} : memref<144x288xbf16, #tpu.memory_space<vmem>>, vector<12x288xbf16>,
    %c0_109 = arith.constant 0 : index
    %c20_110 = arith.constant 20 : index
    %86 = vector.load %arg16[%c0_109, %c20_110] : memref<28x326xbf16, #tpu.memory_space<vmem>>, vector<12x288xbf16>
    %c60 = arith.constant 60 : index
    %c0_111 = arith.constant 0 : index
    %87 = vector.load %arg17[%c60, %c0_111] : memref<144x288xbf16, #tpu.memory_space<vmem>>, vector<12x288xbf16>
    tpu.vector_store %arg17[%c60, %c0_111], %86 {strides = array<i32>} : memref<144x288xbf16, #tpu.memory_space<vmem>>, vector<12x288xbf16>,
    %c0_112 = arith.constant 0 : index
    %c36_113 = arith.constant 36 : index
    %88 = vector.load %arg16[%c0_112, %c36_113] : memref<28x326xbf16, #tpu.memory_space<vmem>>, vector<12x288xbf16>
    %c72 = arith.constant 72 : index
    %c0_114 = arith.constant 0 : index
    %89 = vector.load %arg17[%c72, %c0_114] : memref<144x288xbf16, #tpu.memory_space<vmem>>, vector<12x288xbf16>
    tpu.vector_store %arg17[%c72, %c0_114], %88 {strides = array<i32>} : memref<144x288xbf16, #tpu.memory_space<vmem>>, vector<12x288xbf16>,
    %c0_115 = arith.constant 0 : index
    %c37_116 = arith.constant 37 : index
    %90 = vector.load %arg16[%c0_115, %c37_116] : memref<28x326xbf16, #tpu.memory_space<vmem>>, vector<12x288xbf16>
    %c84 = arith.constant 84 : index
    %c0_117 = arith.constant 0 : index
    %91 = vector.load %arg17[%c84, %c0_117] : memref<144x288xbf16, #tpu.memory_space<vmem>>, vector<12x288xbf16>
    tpu.vector_store %arg17[%c84, %c0_117], %90 {strides = array<i32>} : memref<144x288xbf16, #tpu.memory_space<vmem>>, vector<12x288xbf16>,
    %c0_118 = arith.constant 0 : index
    %c38_119 = arith.constant 38 : index
    %92 = vector.load %arg16[%c0_118, %c38_119] : memref<28x326xbf16, #tpu.memory_space<vmem>>, vector<12x288xbf16>
    %c96 = arith.constant 96 : index
    %c0_120 = arith.constant 0 : index
    %93 = vector.load %arg17[%c96, %c0_120] : memref<144x288xbf16, #tpu.memory_space<vmem>>, vector<12x288xbf16>
    tpu.vector_store %arg17[%c96, %c0_120], %92 {strides = array<i32>} : memref<144x288xbf16, #tpu.memory_space<vmem>>, vector<12x288xbf16>,
    %c0_121 = arith.constant 0 : index
    %c0_122 = arith.constant 0 : index
    %94 = vector.load %arg7[%c0_121, %c0_122] : memref<4x108xbf16, #tpu.memory_space<vmem>>, vector<4x108xbf16>
    %c0_123 = arith.constant 0 : index
    %c0_124 = arith.constant 0 : index
    %95 = vector.load %arg17[%c0_123, %c0_124] : memref<144x288xbf16, #tpu.memory_space<vmem>>, vector<108x288xbf16>
    %cst_125 = arith.constant dense<0.000000e+00> : vector<4x288xf32>
    %96 = tpu.matmul %94, %95, %cst_125 {dimension_numbers = #tpu.dot_dimension_numbers<[1], [0], [0], [1], [0, 0, 1, 1], [], []>} : vector<4x108xbf16>, vector<108x288xbf16>, vector<4x288xf32> -> vector<4x288xf32>
    %c0_126 = arith.constant 0 : index
    %c0_127 = arith.constant 0 : index
    %97 = vector.load %arg11[%c0_126, %c0_127] : memref<4x1xf32, #tpu.memory_space<vmem>>, vector<4x1xf32>
    %98 = vector.broadcast %97 : vector<4x1xf32> to vector<4x288xf32>
    %99 = arith.addf %96, %98 : vector<4x288xf32>
    %cst_128 = arith.constant 0.000000e+00 : f32
    %100 = vector.broadcast %cst_128 : f32 to vector<4x288xf32>
    %101 = arith.maximumf %99, %100 : vector<4x288xf32>
    %102 = vector.broadcast %3 : vector<1x288xf32> to vector<4x288xf32>
    %103 = arith.mulf %101, %102 : vector<4x288xf32>
    %104 = arith.truncf %103 : vector<4x288xf32> to vector<4x288xbf16>
    %c12_129 = arith.constant 12 : index
    %c19_130 = arith.constant 19 : index
    %105 = vector.load %arg16[%c12_129, %c19_130] : memref<28x326xbf16, #tpu.memory_space<vmem>>, vector<4x288xbf16>
    tpu.vector_store %arg16[%c12_129, %c19_130], %104 {strides = array<i32>} : memref<28x326xbf16, #tpu.memory_space<vmem>>, vector<4x288xbf16>,
    %c0_131 = arith.constant 0 : index
    %c0_132 = arith.constant 0 : index
    %106 = vector.load %arg16[%c0_131, %c0_132] : memref<28x326xbf16, #tpu.memory_space<vmem>>, vector<16x288xbf16>
    %c0_133 = arith.constant 0 : index
    %c0_134 = arith.constant 0 : index
    %107 = vector.load %arg17[%c0_133, %c0_134] : memref<144x288xbf16, #tpu.memory_space<vmem>>, vector<16x288xbf16>
    tpu.vector_store %arg17[%c0_133, %c0_134], %106 {strides = array<i32>} : memref<144x288xbf16, #tpu.memory_space<vmem>>, vector<16x288xbf16>,
    %c0_135 = arith.constant 0 : index
    %c1_136 = arith.constant 1 : index
    %108 = vector.load %arg16[%c0_135, %c1_136] : memref<28x326xbf16, #tpu.memory_space<vmem>>, vector<16x288xbf16>
    %c16_137 = arith.constant 16 : index
    %c0_138 = arith.constant 0 : index
    %109 = vector.load %arg17[%c16_137, %c0_138] : memref<144x288xbf16, #tpu.memory_space<vmem>>, vector<16x288xbf16>
    tpu.vector_store %arg17[%c16_137, %c0_138], %108 {strides = array<i32>} : memref<144x288xbf16, #tpu.memory_space<vmem>>, vector<16x288xbf16>,
    %c0_139 = arith.constant 0 : index
    %c2_140 = arith.constant 2 : index
    %110 = vector.load %arg16[%c0_139, %c2_140] : memref<28x326xbf16, #tpu.memory_space<vmem>>, vector<16x288xbf16>
    %c32_141 = arith.constant 32 : index
    %c0_142 = arith.constant 0 : index
    %111 = vector.load %arg17[%c32_141, %c0_142] : memref<144x288xbf16, #tpu.memory_space<vmem>>, vector<16x288xbf16>
    tpu.vector_store %arg17[%c32_141, %c0_142], %110 {strides = array<i32>} : memref<144x288xbf16, #tpu.memory_space<vmem>>, vector<16x288xbf16>,
    %c0_143 = arith.constant 0 : index
    %c18_144 = arith.constant 18 : index
    %112 = vector.load %arg16[%c0_143, %c18_144] : memref<28x326xbf16, #tpu.memory_space<vmem>>, vector<16x288xbf16>
    %c48_145 = arith.constant 48 : index
    %c0_146 = arith.constant 0 : index
    %113 = vector.load %arg17[%c48_145, %c0_146] : memref<144x288xbf16, #tpu.memory_space<vmem>>, vector<16x288xbf16>
    tpu.vector_store %arg17[%c48_145, %c0_146], %112 {strides = array<i32>} : memref<144x288xbf16, #tpu.memory_space<vmem>>, vector<16x288xbf16>,
    %c0_147 = arith.constant 0 : index
    %c19_148 = arith.constant 19 : index
    %114 = vector.load %arg16[%c0_147, %c19_148] : memref<28x326xbf16, #tpu.memory_space<vmem>>, vector<16x288xbf16>
    %c64_149 = arith.constant 64 : index
    %c0_150 = arith.constant 0 : index
    %115 = vector.load %arg17[%c64_149, %c0_150] : memref<144x288xbf16, #tpu.memory_space<vmem>>, vector<16x288xbf16>
    tpu.vector_store %arg17[%c64_149, %c0_150], %114 {strides = array<i32>} : memref<144x288xbf16, #tpu.memory_space<vmem>>, vector<16x288xbf16>,
    %c0_151 = arith.constant 0 : index
    %c20_152 = arith.constant 20 : index
    %116 = vector.load %arg16[%c0_151, %c20_152] : memref<28x326xbf16, #tpu.memory_space<vmem>>, vector<16x288xbf16>
    %c80 = arith.constant 80 : index
    %c0_153 = arith.constant 0 : index
    %117 = vector.load %arg17[%c80, %c0_153] : memref<144x288xbf16, #tpu.memory_space<vmem>>, vector<16x288xbf16>
    tpu.vector_store %arg17[%c80, %c0_153], %116 {strides = array<i32>} : memref<144x288xbf16, #tpu.memory_space<vmem>>, vector<16x288xbf16>,
    %c0_154 = arith.constant 0 : index
    %c36_155 = arith.constant 36 : index
    %118 = vector.load %arg16[%c0_154, %c36_155] : memref<28x326xbf16, #tpu.memory_space<vmem>>, vector<16x288xbf16>
    %c96_156 = arith.constant 96 : index
    %c0_157 = arith.constant 0 : index
    %119 = vector.load %arg17[%c96_156, %c0_157] : memref<144x288xbf16, #tpu.memory_space<vmem>>, vector<16x288xbf16>
    tpu.vector_store %arg17[%c96_156, %c0_157], %118 {strides = array<i32>} : memref<144x288xbf16, #tpu.memory_space<vmem>>, vector<16x288xbf16>,
    %c0_158 = arith.constant 0 : index
    %c37_159 = arith.constant 37 : index
    %120 = vector.load %arg16[%c0_158, %c37_159] : memref<28x326xbf16, #tpu.memory_space<vmem>>, vector<16x288xbf16>
    %c112 = arith.constant 112 : index
    %c0_160 = arith.constant 0 : index
    %121 = vector.load %arg17[%c112, %c0_160] : memref<144x288xbf16, #tpu.memory_space<vmem>>, vector<16x288xbf16>
    tpu.vector_store %arg17[%c112, %c0_160], %120 {strides = array<i32>} : memref<144x288xbf16, #tpu.memory_space<vmem>>, vector<16x288xbf16>,
    %c0_161 = arith.constant 0 : index
    %c38_162 = arith.constant 38 : index
    %122 = vector.load %arg16[%c0_161, %c38_162] : memref<28x326xbf16, #tpu.memory_space<vmem>>, vector<16x288xbf16>
    %c128 = arith.constant 128 : index
    %c0_163 = arith.constant 0 : index
    %123 = vector.load %arg17[%c128, %c0_163] : memref<144x288xbf16, #tpu.memory_space<vmem>>, vector<16x288xbf16>
    tpu.vector_store %arg17[%c128, %c0_163], %122 {strides = array<i32>} : memref<144x288xbf16, #tpu.memory_space<vmem>>, vector<16x288xbf16>,
    %c0_164 = arith.constant 0 : index
    %c0_165 = arith.constant 0 : index
    %124 = vector.load %arg8[%c0_164, %c0_165] : memref<4x144xbf16, #tpu.memory_space<vmem>>, vector<4x144xbf16>
    %c0_166 = arith.constant 0 : index
    %c0_167 = arith.constant 0 : index
    %125 = vector.load %arg17[%c0_166, %c0_167] : memref<144x288xbf16, #tpu.memory_space<vmem>>, vector<144x288xbf16>
    %cst_168 = arith.constant dense<0.000000e+00> : vector<4x288xf32>
    %126 = tpu.matmul %124, %125, %cst_168 {dimension_numbers = #tpu.dot_dimension_numbers<[1], [0], [0], [1], [0, 0, 1, 1], [], []>} : vector<4x144xbf16>, vector<144x288xbf16>, vector<4x288xf32> -> vector<4x288xf32>
    %c0_169 = arith.constant 0 : index
    %c0_170 = arith.constant 0 : index
    %127 = vector.load %arg12[%c0_169, %c0_170] : memref<4x1xf32, #tpu.memory_space<vmem>>, vector<4x1xf32>
    %128 = vector.broadcast %127 : vector<4x1xf32> to vector<4x288xf32>
    %129 = arith.addf %126, %128 : vector<4x288xf32>
    %cst_171 = arith.constant 0.000000e+00 : f32
    %130 = vector.broadcast %cst_171 : f32 to vector<4x288xf32>
    %131 = arith.maximumf %129, %130 : vector<4x288xf32>
    %132 = vector.broadcast %3 : vector<1x288xf32> to vector<4x288xf32>
    %133 = arith.mulf %131, %132 : vector<4x288xf32>
    %134 = arith.truncf %133 : vector<4x288xf32> to vector<4x288xbf16>
    %c24_172 = arith.constant 24 : index
    %c19_173 = arith.constant 19 : index
    %135 = vector.load %arg16[%c24_172, %c19_173] : memref<28x326xbf16, #tpu.memory_space<vmem>>, vector<4x288xbf16>
    tpu.vector_store %arg16[%c24_172, %c19_173], %134 {strides = array<i32>} : memref<28x326xbf16, #tpu.memory_space<vmem>>, vector<4x288xbf16>,
    %c16_174 = arith.constant 16 : index
    %c0_175 = arith.constant 0 : index
    %136 = vector.load %arg16[%c16_174, %c0_175] : memref<28x326xbf16, #tpu.memory_space<vmem>>, vector<12x288xbf16>
    %c0_176 = arith.constant 0 : index
    %c0_177 = arith.constant 0 : index
    %137 = vector.load %arg17[%c0_176, %c0_177] : memref<144x288xbf16, #tpu.memory_space<vmem>>, vector<12x288xbf16>
    tpu.vector_store %arg17[%c0_176, %c0_177], %136 {strides = array<i32>} : memref<144x288xbf16, #tpu.memory_space<vmem>>, vector<12x288xbf16>,
    %c16_178 = arith.constant 16 : index
    %c1_179 = arith.constant 1 : index
    %138 = vector.load %arg16[%c16_178, %c1_179] : memref<28x326xbf16, #tpu.memory_space<vmem>>, vector<12x288xbf16>
    %c12_180 = arith.constant 12 : index
    %c0_181 = arith.constant 0 : index
    %139 = vector.load %arg17[%c12_180, %c0_181] : memref<144x288xbf16, #tpu.memory_space<vmem>>, vector<12x288xbf16>
    tpu.vector_store %arg17[%c12_180, %c0_181], %138 {strides = array<i32>} : memref<144x288xbf16, #tpu.memory_space<vmem>>, vector<12x288xbf16>,
    %c16_182 = arith.constant 16 : index
    %c2_183 = arith.constant 2 : index
    %140 = vector.load %arg16[%c16_182, %c2_183] : memref<28x326xbf16, #tpu.memory_space<vmem>>, vector<12x288xbf16>
    %c24_184 = arith.constant 24 : index
    %c0_185 = arith.constant 0 : index
    %141 = vector.load %arg17[%c24_184, %c0_185] : memref<144x288xbf16, #tpu.memory_space<vmem>>, vector<12x288xbf16>
    tpu.vector_store %arg17[%c24_184, %c0_185], %140 {strides = array<i32>} : memref<144x288xbf16, #tpu.memory_space<vmem>>, vector<12x288xbf16>,
    %c16_186 = arith.constant 16 : index
    %c18_187 = arith.constant 18 : index
    %142 = vector.load %arg16[%c16_186, %c18_187] : memref<28x326xbf16, #tpu.memory_space<vmem>>, vector<12x288xbf16>
    %c36_188 = arith.constant 36 : index
    %c0_189 = arith.constant 0 : index
    %143 = vector.load %arg17[%c36_188, %c0_189] : memref<144x288xbf16, #tpu.memory_space<vmem>>, vector<12x288xbf16>
    tpu.vector_store %arg17[%c36_188, %c0_189], %142 {strides = array<i32>} : memref<144x288xbf16, #tpu.memory_space<vmem>>, vector<12x288xbf16>,
    %c16_190 = arith.constant 16 : index
    %c19_191 = arith.constant 19 : index
    %144 = vector.load %arg16[%c16_190, %c19_191] : memref<28x326xbf16, #tpu.memory_space<vmem>>, vector<12x288xbf16>
    %c48_192 = arith.constant 48 : index
    %c0_193 = arith.constant 0 : index
    %145 = vector.load %arg17[%c48_192, %c0_193] : memref<144x288xbf16, #tpu.memory_space<vmem>>, vector<12x288xbf16>
    tpu.vector_store %arg17[%c48_192, %c0_193], %144 {strides = array<i32>} : memref<144x288xbf16, #tpu.memory_space<vmem>>, vector<12x288xbf16>,
    %c16_194 = arith.constant 16 : index
    %c20_195 = arith.constant 20 : index
    %146 = vector.load %arg16[%c16_194, %c20_195] : memref<28x326xbf16, #tpu.memory_space<vmem>>, vector<12x288xbf16>
    %c60_196 = arith.constant 60 : index
    %c0_197 = arith.constant 0 : index
    %147 = vector.load %arg17[%c60_196, %c0_197] : memref<144x288xbf16, #tpu.memory_space<vmem>>, vector<12x288xbf16>
    tpu.vector_store %arg17[%c60_196, %c0_197], %146 {strides = array<i32>} : memref<144x288xbf16, #tpu.memory_space<vmem>>, vector<12x288xbf16>,
    %c16_198 = arith.constant 16 : index
    %c36_199 = arith.constant 36 : index
    %148 = vector.load %arg16[%c16_198, %c36_199] : memref<28x326xbf16, #tpu.memory_space<vmem>>, vector<12x288xbf16>
    %c72_200 = arith.constant 72 : index
    %c0_201 = arith.constant 0 : index
    %149 = vector.load %arg17[%c72_200, %c0_201] : memref<144x288xbf16, #tpu.memory_space<vmem>>, vector<12x288xbf16>
    tpu.vector_store %arg17[%c72_200, %c0_201], %148 {strides = array<i32>} : memref<144x288xbf16, #tpu.memory_space<vmem>>, vector<12x288xbf16>,
    %c16_202 = arith.constant 16 : index
    %c37_203 = arith.constant 37 : index
    %150 = vector.load %arg16[%c16_202, %c37_203] : memref<28x326xbf16, #tpu.memory_space<vmem>>, vector<12x288xbf16>
    %c84_204 = arith.constant 84 : index
    %c0_205 = arith.constant 0 : index
    %151 = vector.load %arg17[%c84_204, %c0_205] : memref<144x288xbf16, #tpu.memory_space<vmem>>, vector<12x288xbf16>
    tpu.vector_store %arg17[%c84_204, %c0_205], %150 {strides = array<i32>} : memref<144x288xbf16, #tpu.memory_space<vmem>>, vector<12x288xbf16>,
    %c16_206 = arith.constant 16 : index
    %c38_207 = arith.constant 38 : index
    %152 = vector.load %arg16[%c16_206, %c38_207] : memref<28x326xbf16, #tpu.memory_space<vmem>>, vector<12x288xbf16>
    %c96_208 = arith.constant 96 : index
    %c0_209 = arith.constant 0 : index
    %153 = vector.load %arg17[%c96_208, %c0_209] : memref<144x288xbf16, #tpu.memory_space<vmem>>, vector<12x288xbf16>
    tpu.vector_store %arg17[%c96_208, %c0_209], %152 {strides = array<i32>} : memref<144x288xbf16, #tpu.memory_space<vmem>>, vector<12x288xbf16>,
    %c0_210 = arith.constant 0 : index
    %c0_211 = arith.constant 0 : index
    %154 = vector.load %arg13[%c0_210, %c0_211] : memref<16x108xbf16, #tpu.memory_space<vmem>>, vector<16x108xbf16>
    %c0_212 = arith.constant 0 : index
    %c0_213 = arith.constant 0 : index
    %155 = vector.load %arg17[%c0_212, %c0_213] : memref<144x288xbf16, #tpu.memory_space<vmem>>, vector<108x288xbf16>
    %cst_214 = arith.constant dense<0.000000e+00> : vector<16x288xf32>
    %156 = tpu.matmul %154, %155, %cst_214 {dimension_numbers = #tpu.dot_dimension_numbers<[1], [0], [0], [1], [0, 0, 1, 1], [], []>} : vector<16x108xbf16>, vector<108x288xbf16>, vector<16x288xf32> -> vector<16x288xf32>
    %c0_215 = arith.constant 0 : index
    %c0_216 = arith.constant 0 : index
    %157 = vector.load %arg14[%c0_215, %c0_216] : memref<16x1xf32, #tpu.memory_space<vmem>>, vector<16x1xf32>
    %158 = vector.broadcast %157 : vector<16x1xf32> to vector<16x288xf32>
    %159 = arith.addf %156, %158 : vector<16x288xf32>
    %cst_217 = arith.constant 0.000000e+00 : f32
    %160 = vector.broadcast %cst_217 : f32 to vector<16x288xf32>
    %161 = arith.maximumf %159, %160 : vector<16x288xf32>
    %c0_218 = arith.constant 0 : index
    %c0_219 = arith.constant 0 : index
    %c0_220 = arith.constant 0 : index
    %162 = vector.load %arg15[%c0_218, %c0_219, %c0_220] : memref<1x16x288xf32, #tpu.memory_space<vmem>>, vector<1x16x288xf32>
    %163 = vector.shape_cast %162 : vector<1x16x288xf32> to vector<16x288xf32>
    %164 = vector.shape_cast %161 : vector<16x288xf32> to vector<1x16x288xf32>
    tpu.vector_store %arg15[%c0_218, %c0_219, %c0_220], %164 {strides = array<i32>} : memref<1x16x288xf32, #tpu.memory_space<vmem>>, vector<1x16x288xf32>,
    return
  }
  func.func @transform_0(%arg0: i32) -> (i32, i32, i32) {
    %c0_i32 = arith.constant 0 : i32
    %c0_i32_0 = arith.constant 0 : i32
    %c0_i32_1 = arith.constant 0 : i32
    return %arg0, %c0_i32, %c0_i32_0 : i32, i32, i32
  }
  func.func @transform_1(%arg0: i32) -> (i32, i32) {
    %c0_i32 = arith.constant 0 : i32
    %c0_i32_0 = arith.constant 0 : i32
    %c0_i32_1 = arith.constant 0 : i32
    return %c0_i32, %c0_i32_0 : i32, i32
  }
  func.func @transform_2(%arg0: i32) -> (i32, i32) {
    %c0_i32 = arith.constant 0 : i32
    %c0_i32_0 = arith.constant 0 : i32
    %c0_i32_1 = arith.constant 0 : i32
    return %c0_i32, %c0_i32_0 : i32, i32
  }
  func.func @transform_3(%arg0: i32) -> (i32, i32) {
    %c0_i32 = arith.constant 0 : i32
    %c0_i32_0 = arith.constant 0 : i32
    %c0_i32_1 = arith.constant 0 : i32
    return %c0_i32, %c0_i32_0 : i32, i32
  }
  func.func @transform_4(%arg0: i32) -> (i32, i32) {
    %c0_i32 = arith.constant 0 : i32
    %c0_i32_0 = arith.constant 0 : i32
    %c0_i32_1 = arith.constant 0 : i32
    return %c0_i32, %c0_i32_0 : i32, i32
  }
  func.func @transform_5(%arg0: i32) -> (i32, i32) {
    %c0_i32 = arith.constant 0 : i32
    %c0_i32_0 = arith.constant 0 : i32
    %c0_i32_1 = arith.constant 0 : i32
    return %c0_i32, %c0_i32_0 : i32, i32
  }
  func.func @transform_6(%arg0: i32) -> (i32, i32) {
    %c0_i32 = arith.constant 0 : i32
    %c0_i32_0 = arith.constant 0 : i32
    %c0_i32_1 = arith.constant 0 : i32
    return %c0_i32, %c0_i32_0 : i32, i32
  }
  func.func @transform_7(%arg0: i32) -> (i32, i32) {
    %c0_i32 = arith.constant 0 : i32
    %c0_i32_0 = arith.constant 0 : i32
    %c0_i32_1 = arith.constant 0 : i32
    return %c0_i32, %c0_i32_0 : i32, i32
  }
  func.func @transform_8(%arg0: i32) -> (i32, i32) {
    %c0_i32 = arith.constant 0 : i32
    %c0_i32_0 = arith.constant 0 : i32
    %c0_i32_1 = arith.constant 0 : i32
    return %c0_i32, %c0_i32_0 : i32, i32
  }
  func.func @transform_9(%arg0: i32) -> (i32, i32) {
    %c0_i32 = arith.constant 0 : i32
    %c0_i32_0 = arith.constant 0 : i32
    %c0_i32_1 = arith.constant 0 : i32
    return %c0_i32, %c0_i32_0 : i32, i32
  }
  func.func @transform_10(%arg0: i32) -> (i32, i32) {
    %c0_i32 = arith.constant 0 : i32
    %c0_i32_0 = arith.constant 0 : i32
    %c0_i32_1 = arith.constant 0 : i32
    return %c0_i32, %c0_i32_0 : i32, i32
  }
  func.func @transform_11(%arg0: i32) -> (i32, i32) {
    %c0_i32 = arith.constant 0 : i32
    %c0_i32_0 = arith.constant 0 : i32
    %c0_i32_1 = arith.constant 0 : i32
    return %c0_i32, %c0_i32_0 : i32, i32
  }
  func.func @transform_12(%arg0: i32) -> (i32, i32) {
    %c0_i32 = arith.constant 0 : i32
    %c0_i32_0 = arith.constant 0 : i32
    %c0_i32_1 = arith.constant 0 : i32
    return %c0_i32, %c0_i32_0 : i32, i32
  }
  func.func @transform_13(%arg0: i32) -> (i32, i32) {
    %c0_i32 = arith.constant 0 : i32
    %c0_i32_0 = arith.constant 0 : i32
    %c0_i32_1 = arith.constant 0 : i32
    return %c0_i32, %c0_i32_0 : i32, i32
  }
  func.func @transform_14(%arg0: i32) -> (i32, i32, i32) {
    %c0_i32 = arith.constant 0 : i32
    %c0_i32_0 = arith.constant 0 : i32
    %c0_i32_1 = arith.constant 0 : i32
    return %arg0, %c0_i32, %c0_i32_0 : i32, i32, i32
  }
}

</mosaic_0001>

<bundles_post_ra>
// kernel: dense_layer_forward.1
= control target key start
LH: loop header
LB: loop body
LE: loop exit
PB: predicated region body
PF: predicated region fallthrough
CT: control target
= control target key end

     0   :  { %s3312_s29 = smov 0   ;;  %s3869_s0 = inlined_call_operand.vmem [shape: bf16[2,8,288], index: 0, kind: input, shape index: {}]   ;;  %s3870_s1 = inlined_call_operand.vmem [shape: f32[1,288], index: 1, kind: input, shape index: {}]   ;;  %s3871_s2 = inlined_call_operand.vmem [shape: bf16[4,8], index: 2, kind: input, shape index: {}]   ;;  %s3872_s3 = inlined_call_operand.vmem [shape: f32[4,1], index: 3, kind: input, shape index: {}]   ;;  %s3873_s4 = inlined_call_operand.vmem [shape: bf16[4,36], index: 4, kind: input, shape index: {}]   ;;  %s3874_s5 = inlined_call_operand.vmem [shape: bf16[4,72], index: 5, kind: input, shape index: {}]   ;;  %s3875_s6 = inlined_call_operand.vmem [shape: bf16[4,108], index: 6, kind: input, shape index: {}]   ;;  %s3876_s7 = inlined_call_operand.vmem [shape: bf16[4,144], index: 7, kind: input, shape index: {}]   ;;  %s3877_s8 = inlined_call_operand.vmem [shape: f32[4,1], index: 8, kind: input, shape index: {}]   ;;  %s3878_s9 = inlined_call_operand.vmem [shape: f32[4,1], index: 9, kind: input, shape index: {}]   ;;  %s3879_s10 = inlined_call_operand.vmem [shape: f32[4,1], index: 10, kind: input, shape index: {}]   ;;  %s3880_s11 = inlined_call_operand.vmem [shape: f32[4,1], index: 11, kind: input, shape index: {}]   ;;  %s3881_s12 = inlined_call_operand.vmem [shape: bf16[16,108], index: 12, kind: input, shape index: {}]   ;;  %s3882_s13 = inlined_call_operand.vmem [shape: f32[16,1], index: 13, kind: input, shape index: {}]   ;;  %s3883_s14 = inlined_call_operand.vmem [shape: f32[2,16,288], index: 14, kind: output, shape index: {}]  }
   0x1 LB: > { %s2819_s30 = sadd.s32 4294967295, %s3223_s29   ;;  %p2823_p0 = scmp.ge.s32.totalorder %s3223_s29, 1  ;;  %s3223_s29 = sphi %s3312_s29, %s24_s29  }
   0x2   : > { %p412_p1 = scmp.lt.s32.totalorder %s3223_s29, 3 }
   0x4   : > { %p413_p2 = pnand %p2823_p0, %p412_p1 }
   0x5   : > { %p458_p3 = scmp.lt.s32.totalorder (!%p413_p2), %s2819_s30, 1  ;;  %v3225_v0 = vmov (!%p413_p2), 0.0   ;;  %v3226_v1 = vmov (!%p413_p2), 0   ;;  %v503_v2 = vld [vmem:[%s3872_s3] sm:$0xf] (!%p413_p2)  ;;  %vm3887_vm0 = vmmov (!%p413_p2), 0   ;;  %v611_v11 = vlaneseq (!%p413_p2) }
   0x6   : > { %416 = sbr.rel (%p413_p2) target bundleno = 2846 (0xb1e), region = 76  ;;  %3045 = vmatprep.subr.bf16.mxu1 (!%p413_p2), %v3225_v0  ;;  %561 = vmatprep.mubr.bf16.mxu0 (!%p413_p2), %v3226_v1  ;;  %vm519_vm1 = vcmask (!%p413_p2), 1043456   ;;  %v502_v10 = vld [vmem:[%s3871_s2] sm:$0x3] (!%p413_p2)  ;;  %vm515_vm2 = vcmask (!%p413_p2), 64512   ;;  %vm469_vm3 = vcmask (!%p413_p2), 150528  }
   0x7   : > { %3047 = vmatprep.mubr.msk.bf16.mxu1 (!%p413_p2), %vm3887_vm0, %v3225_v0  ;;  %3133 = vset.pattern.permute.xlu0 (!%p413_p2), %v3226_v1  ;;  %v612_v12 = vshrl.u32 (!%p413_p2), %v611_v11, 7  ;;  %vm475_vm4 = vcmask (!%p413_p2), 568728   ;;  %470 = vst.msk [vmem:[#allocation2] sm:$0xf] (!%p413_p2), %vm469_vm3, %v3226_v1  ;;  %471 = vst.msk [vmem:[#allocation2 + $0xc] sm:$0xf] (!%p413_p2), %vm469_vm3, %v3226_v1 }
   0x8   : > { %506 = vperm.xlu0 (!%p413_p2), %3133, %v503_v2   ;;  %3134 = vset.pattern.permute.xlu1 (!%p413_p2), %v3226_v1  ;;  %476 = vst.msk [vmem:[#allocation2 + $0x8] sm:$0xf] (!%p413_p2), %vm475_vm4, %v3226_v1  ;;  %477 = vst.msk [vmem:[#allocation2 + $0x14] sm:$0xf] (!%p413_p2), %vm475_vm4, %v3226_v1  ;;  %v481_v15 = vld [vmem:[%s3870_s1] sm:$0x7] (!%p413_p2) }
   0x9   : > { %472 = vst.msk [vmem:[#allocation2 + $0x18] sm:$0xf] (!%p413_p2), %vm469_vm3, %v3226_v1  ;;  %v613_v13 = vsub.s32 (!%p413_p2), 0, %v612_v12  ;;  %v621_v14 = vsub.s32 (!%p413_p2), 2, %v612_v12  ;;  %v617_v16 = vsub.s32 (!%p413_p2), 1, %v612_v12  ;;  %s3228_s25 = smov (!%p413_p2), 19  }
   0xa   : > { %478 = vst.msk [vmem:[#allocation2 + $0x20] sm:$0xf] (!%p413_p2), %vm475_vm4, %v3226_v1  ;;  %vm649_vm5 = vcmask (!%p413_p2), 1041560   ;;  %vm650_vm6 = vcmask (!%p413_p2), 1045508   ;;  %vm491_vm7 = vcmask (!%p413_p2), 154624   ;;  %vm3886_vm9 = vcmask (!%p413_p2), 410624  }
   0xb   : > { %v3358_v18 = vrot.slane (!%p413_p2), %v481_v15, %v613_v13  ;;  %v3360_v19 = vrot.slane (!%p413_p2), %v481_v15, %v621_v14  ;;  %v3362_v22 = vrot.slane (!%p413_p2), %v481_v15, %v617_v16  ;;  %vm3369_vm8 = vmor (!%p413_p2), %vm650_vm6, %vm649_vm5  ;;  %s3229_s26 = smov (!%p413_p2), 126   ;;  %s3230_s27 = smov (!%p413_p2), 109   ;;  %vm3885_vm10 = vcmask (!%p413_p2), 254976  }
   0xc   : > { %s3231_s28 = smov (!%p413_p2), 92   ;;  %s3232_s15 = smov (!%p413_p2), 127   ;;  %vm725_vm11 = vcmask (!%p413_p2), 259076   ;;  %vm717_vm12 = vcmask (!%p413_p2), 1031168   ;;  %vm3891_vm13 = vcmask (!%p413_p2), 891904   ;;  %vm825_vm14 = vcmask (!%p413_p2), 752640  }
   0xd   : > { %s3928_s30 = smov (!%p458_p3, %s2819_s30), 1  ;;  %s3233_s16 = smov 110   ;;  %vm691_vm15 = vcmask 1039360   ;;  %vm699_vm3 = vcmask 257026   ;;  %vm3884_vm4 = vcmask 261126   ;;  %vm800_vm5 = vcmask 883712  }
   0xe   : > { %s3111_s17 = smul.u32 12, %s3928_s30  ;;  %s3235_s18 = smov 108   ;;  %vm3895_vm6 = vcmask 744448  }
   0xf   : > { %s3236_s19 = smov 91  }
  0x10   : > { %s3335_s20 = scalar_lea.vmem %s3869_s0, %s3111_s17  ;;  %s3234_s17 = smov 90  }
  0x11   : > { %v482_v3 = vld [vmem:[%s3335_s20] sm:$0xff]  ;;  %v483_v4 = vld [vmem:[%s3335_s20 + $0x8] sm:$0xf] }
  0x12   : > { %v2827_v5 = vcombine.high %v482_v3, %v482_v3  ;;  %v2826_v6 = vcombine.low %v482_v3, %v482_v3  ;;  %v2828_v7 = vcombine.low %v483_v4, %v483_v4 }
  0x14   : > { %2829 = vmatprep.subr.msk.bf16.mxu0 %vm519_vm1, %v2827_v5  ;;  %v521_v8 = vsel %vm519_vm1, %v2826_v6, 0  ;;  %v527_v9 = vsel %vm519_vm1, %v2828_v7, 0 }
  0x15   : > { %530 = vmatpush1.bf16.msra.mxu0 %v521_v8  ;;  %3046 = vmatpush3.bf16.msra.mxu1 %v527_v9 }
  0x16   : > { %3051 = vmatprep.subr.bf16.mxu1 %v3225_v0 }
  0x18   : > { %2830 = vmatmul.mubr.msk.bf16.vlgmr.msra.gmra.mrb[0].mxu0 %vm515_vm2, %v502_v10  ;;  %3048 = vmatmul.mubr.msk.bf16.vlgmr.msra.gmra.mrb[0].mxu1 %vm515_vm2, %v502_v10  ;;  %vm746_vm2 = vcmask 900096  }
  0x19   : > { %949 = vmatprep.mubr.bf16.mxu0 %v3226_v1  ;;  %3057 = vmatprep.mubr.msk.bf16.mxu1 %vm3887_vm0, %v3225_v0 }
  0x87   : > { %v507_v17 = vpop.permute.xlu0 %506 }
  0xeb   : > { %v563_v20 = vpop.f32.mrb[0].mxu0  ;;  %v604_v21 = vpop.f32.mrb[0].mxu1 }
  0xec   : > { %v564_v23 = vadd.f32 %v563_v20, %v507_v17  ;;  %v605_v24 = vadd.f32 %v604_v21, %v507_v17  ;;  %v565_v25 = vpop.f32.mrb[1].mxu0  ;;  %v3049_v26 = vpop.f32.mrb[1].mxu1 }
  0xed   : > { %v566_v27 = vadd.f32 %v565_v25, %v507_v17  ;;  %v567_v28 = vpop.f32.mrb[2].mxu0  ;;  %v607_v29 = vpop.f32.mrb[2].mxu1 }
  0xee   : > { %v626_v30 = vmul.f32 %v3358_v18, %v564_v23  ;;  %v568_v31 = vpop.f32.mrb[3].mxu0  ;;  %v3050_v32 = vpop.f32.mrb[3].mxu1  ;;  %v628_v33 = vmul.f32 %v3360_v19, %v605_v24 }
  0xef   : > { %v627_v34 = vmul.f32 %v3362_v22, %v566_v27  ;;  %v897_v32 = vld [vmem:[%s3877_s8] sm:$0xf] }
  0xf0   : > { %v3008_v35 = vpack.c.bf16 %v628_v33, %v628_v33 }
  0xf1   : > { %v3007_v36 = vpack.c.bf16 %v627_v34, %v626_v30 }
  0xf2   : > { %642 = vrot.lane.b32.xlu1 %v3008_v35, %s3228_s25 }
  0xf3   : > { %640 = vrot.lane.b32.xlu0 %v3007_v36, %s3228_s25 }
 0x164   : > { %v643_v40 = vpop.permute.xlu1 %642 }
 0x165   : > { %v641_v37 = vpop.permute.xlu0 %640 }
 0x166   : > { %v644_v39 = vrot.slane %v641_v37, 4 }
 0x168   : > { %v645_v41 = vsel %vm491_vm7, %v644_v39, %v641_v37  ;;  %v646_v42 = vsel %vm491_vm7, %v644_v39, %v643_v40 }
 0x169   : > { %652 = vst.msk [vmem:[#allocation2] sm:$0x33] %vm3369_vm8, %v645_v41 }
 0x16a   : > { %654 = vst.msk [vmem:[#allocation2 + $0x8] sm:$0x3] %vm3886_vm9, %v646_v42  ;;  %vm3889_vm9 = vcmask 412674  }
 0x170   : > { %v701_v44 = vld [vmem:[#allocation2] sm:$0x33] }
 0x171   : > { %v3138_v43 = vld [vmem:[#allocation2 + $0x8] ss:$0 sps:$4 sm:$0x33]   ;;  %v2841_v45 = vcombine.high %v701_v44, %v701_v44  ;;  %v2840_v46 = vcombine.low %v701_v44, %v701_v44  ;;  %v756_v47 = vld [vmem:[#allocation2] sm:$0x33] }
 0x172   : > { %715 = vrot.lane.b32.xlu0 %v3138_v43, %s3229_s26  ;;  %v3140_v48 = vld [vmem:[#allocation2 + $0x8] ss:$0 sps:$4 sm:$0x33]   ;;  %v672_v49 = vld [vmem:[#allocation2] sm:$0x33]  ;;  %v2847_v50 = vcombine.high %v756_v47, %v756_v47  ;;  %v2846_v62 = vcombine.low %v756_v47, %v756_v47 }
 0x173   : > { %713 = vrot.lane.b32.xlu1 %v2841_v45, %s3229_s26  ;;  %v809_v51 = vld [vmem:[#allocation2] sm:$0x33]  ;;  %v3142_v52 = vld [vmem:[#allocation2 + $0x8] ss:$0 sps:$4 sm:$0x33]   ;;  %v2838_v53 = vcombine.high %v672_v49, %v672_v49  ;;  %v2837_v2 = vcombine.low %v672_v49, %v672_v49 }
 0x174   : > { %v727_v54 = vld [vmem:[#allocation2] sm:$0x33]  ;;  %v2853_v55 = vcombine.high %v809_v51, %v809_v51  ;;  %v3162_v56 = vld [vmem:[#allocation2 + $0x8] ss:$0 sps:$4 sm:$0x33]   ;;  %v2852_v3 = vcombine.low %v809_v51, %v809_v51 }
 0x175   : > { %v655_v57 = vld [vmem:[#allocation2] sm:$0x33]  ;;  %v683_v58 = vrot.slane %v2838_v53, 6  ;;  %v2844_v59 = vcombine.high %v727_v54, %v727_v54  ;;  %671 = vst.msk [vmem:[#allocation3 + $0x10] sm:$0x3] %vm3885_vm10, %v3162_v56  ;;  %v682_v5 = vrot.slane %v2837_v2, 6  ;;  %v2843_v6 = vcombine.low %v727_v54, %v727_v54 }
 0x176   : > { %711 = vrot.lane.b32.xlu0 %v2840_v46, %s3229_s26  ;;  %v2835_v60 = vcombine.high %v655_v57, %v655_v57  ;;  %v2834_v61 = vcombine.low %v655_v57, %v655_v57  ;;  %v862_v4 = vld [vmem:[#allocation2] sm:$0x33]  ;;  %v3152_v8 = vld [vmem:[#allocation2 + $0x8] ss:$0 sps:$4 sm:$0x33]  }
 0x177   : > { %770 = vrot.lane.b32.xlu1 %v3140_v48, %s3230_s27  ;;  %v738_v63 = vrot.slane %v2844_v59, 2  ;;  %v2858_v7 = vcombine.low %v862_v4, %v862_v4  ;;  %v737_v9 = vrot.slane %v2843_v6, 2  ;;  %v3153_v10 = vld [vmem:[#allocation2 + $0x8] ss:$0 sps:$4 sm:$0x33]   ;;  %v684_v11 = vrot.slane %v3152_v8, 6 }
 0x178   : > { %669 = vst [vmem:[#allocation3 + $0x8] sm:$0x3] %v2835_v60  ;;  %668 = vst [vmem:[#allocation3] sm:$0x3] %v2834_v61  ;;  %v781_v13 = vld [vmem:[#allocation2] sm:$0x33]  ;;  %v2859_v31 = vcombine.high %v862_v4, %v862_v4 }
 0x179   : > { %v3154_v12 = vld [vmem:[#allocation2 + $0x8] ss:$0 sps:$4 sm:$0x33]   ;;  %v793_v14 = vrot.slane %v3153_v10, 6  ;;  %v2850_v17 = vcombine.high %v781_v13, %v781_v13  ;;  %v834_v20 = vld [vmem:[#allocation2] sm:$0x33]  ;;  %v2849_v23 = vcombine.low %v781_v13, %v781_v13 }
 0x17a   : > { %768 = vrot.lane.b32.xlu0 %v2847_v50, %s3230_s27  ;;  %v3155_v15 = vld [vmem:[#allocation2 + $0x8] ss:$0 sps:$4 sm:$0x33]   ;;  %v739_v16 = vrot.slane %v3154_v12, 2  ;;  %v2856_v25 = vcombine.high %v834_v20, %v834_v20  ;;  %v2855_v27 = vcombine.low %v834_v20, %v834_v20 }
 0x17b   : > { %823 = vrot.lane.b32.xlu1 %v3142_v52, %s3231_s28  ;;  %v846_v21 = vrot.slane %v3155_v15, 2  ;;  %v792_v24 = vrot.slane %v2850_v17, 6  ;;  %v791_v26 = vrot.slane %v2849_v23, 6  ;;  %v3160_v30 = vld [vmem:[#allocation2 + $0x8] ss:$0 sps:$4 sm:$0x33]  }
 0x17c   : > { %v845_v28 = vrot.slane %v2856_v25, 2  ;;  %v844_v29 = vrot.slane %v2855_v27, 2  ;;  %v887_v23 = vld [vmem:[%s3873_s4] sm:$0x3] }
 0x17e   : > { %821 = vrot.lane.b32.xlu0 %v2853_v55, %s3231_s28 }
 0x17f   : > { %687 = vrot.lane.b32.xlu1 %v683_v58, %s3232_s15 }
 0x182   : > { %766 = vrot.lane.b32.xlu0 %v2846_v62, %s3230_s27 }
 0x183   : > { %742 = vrot.lane.b32.xlu1 %v738_v63, %s3233_s16 }
 0x186   : > { %819 = vrot.lane.b32.xlu0 %v2852_v3, %s3231_s28 }
 0x187   : > { %685 = vrot.lane.b32.xlu1 %v682_v5, %s3232_s15 }
 0x18a   : > { %872 = vrot.lane.b32.xlu0 %v2858_v7, %s3234_s17 }
 0x18b   : > { %740 = vrot.lane.b32.xlu1 %v737_v9, %s3233_s16 }
 0x18e   : > { %689 = vrot.lane.b32.xlu0 %v684_v11, %s3232_s15 }
 0x18f   : > { %798 = vrot.lane.b32.xlu1 %v793_v14, %s3235_s18 }
 0x192   : > { %744 = vrot.lane.b32.xlu0 %v739_v16, %s3233_s16 }
 0x193   : > { %851 = vrot.lane.b32.xlu1 %v846_v21, %s3236_s19 }
 0x196   : > { %796 = vrot.lane.b32.xlu0 %v792_v24, %s3235_s18 }
 0x197   : > { %794 = vrot.lane.b32.xlu1 %v791_v26, %s3235_s18 }
 0x19a   : > { %849 = vrot.lane.b32.xlu0 %v845_v28, %s3236_s19 }
 0x19b   : > { %847 = vrot.lane.b32.xlu1 %v844_v29, %s3236_s19 }
 0x19e   : > { %876 = vrot.lane.b32.xlu0 %v3160_v30, %s3234_s17 }
 0x19f   : > { %874 = vrot.lane.b32.xlu1 %v2859_v31, %s3234_s17 }
 0x1a3   : > { %900 = vperm.xlu1 %3134, %v897_v32  }
 0x1e4   : > { %v716_v33 = vpop.permute.xlu0 %715 }
 0x1e5   : > { %726 = vst.msk [vmem:[#allocation3 + $0x10] sm:$0x30] %vm725_vm11, %v716_v33  ;;  %v714_v34 = vpop.permute.xlu1 %713 }
 0x1e6   : > { %v719_v35 = vsel %vm717_vm12, %v714_v34, %v716_v33 }
 0x1e7   : > { %724 = vst [vmem:[#allocation3 + $0x8] sm:$0x30] %v719_v35 }
 0x1e8   : > { %v712_v36 = vpop.permute.xlu0 %711 }
 0x1e9   : > { %v718_v37 = vsel %vm717_vm12, %v712_v36, %v714_v34  ;;  %v771_v39 = vpop.permute.xlu1 %770 }
 0x1ea   : > { %723 = vst [vmem:[#allocation3] sm:$0x30] %v718_v37  ;;  %780 = vst.msk [vmem:[#allocation3 + $0x28] sm:$0x3] %vm3885_vm10, %v771_v39 }
 0x1ec   : > { %v769_v40 = vpop.permute.xlu0 %768 }
 0x1ed   : > { %v774_v41 = vsel %vm3891_vm13, %v769_v40, %v771_v39  ;;  %v824_v42 = vpop.permute.xlu1 %823 }
 0x1ee   : > { %779 = vst [vmem:[#allocation3 + $0x20] sm:$0x3] %v774_v41  ;;  %833 = vst.msk [vmem:[#allocation3 + $0x28] sm:$0x30] %vm725_vm11, %v824_v42  ;;  %vm3894_vm11 = vcmask 736256  }
 0x1f0   : > { %v822_v43 = vpop.permute.xlu0 %821 }
 0x1f1   : > { %v827_v44 = vsel %vm825_vm14, %v822_v43, %v824_v42  ;;  %v688_v45 = vpop.permute.xlu1 %687 }
 0x1f2   : > { %832 = vst [vmem:[#allocation3 + $0x20] sm:$0x30] %v827_v44 }
 0x1f4   : > { %v767_v46 = vpop.permute.xlu0 %766 }
 0x1f5   : > { %v773_v47 = vsel %vm3891_vm13, %v767_v46, %v769_v40  ;;  %v743_v48 = vpop.permute.xlu1 %742 }
 0x1f6   : > { %778 = vst [vmem:[#allocation3 + $0x18] sm:$0x3] %v773_v47 }
 0x1f8   : > { %v820_v49 = vpop.permute.xlu0 %819 }
 0x1f9   : > { %v826_v50 = vsel %vm825_vm14, %v820_v49, %v822_v43  ;;  %v686_v51 = vpop.permute.xlu1 %685 }
 0x1fa   : > { %831 = vst [vmem:[#allocation3 + $0x18] sm:$0x30] %v826_v50  ;;  %v692_v52 = vsel %vm691_vm15, %v686_v51, %v688_v45 }
 0x1fb   : > { %697 = vst [vmem:[#allocation3] sm:$0xc] %v692_v52 }
 0x1fc   : > { %v873_v53 = vpop.permute.xlu0 %872 }
 0x1fd   : > { %v741_v54 = vpop.permute.xlu1 %740 }
 0x1fe   : > { %v747_v55 = vsel %vm746_vm2, %v741_v54, %v743_v48 }
 0x1ff   : > { %752 = vst [vmem:[#allocation3] sm:$0xc0] %v747_v55 }
 0x200   : > { %v690_v56 = vpop.permute.xlu0 %689 }
 0x201   : > { %v693_v57 = vsel %vm691_vm15, %v688_v45, %v690_v56  ;;  %700 = vst.msk [vmem:[#allocation3 + $0x10] sm:$0xc] %vm699_vm3, %v690_v56  ;;  %v799_v58 = vpop.permute.xlu1 %798 }
 0x202   : > { %698 = vst [vmem:[#allocation3 + $0x8] sm:$0xc] %v693_v57  ;;  %808 = vst.msk [vmem:[#allocation3 + $0x28] sm:$0xc] %vm699_vm3, %v799_v58  ;;  %vm907_vm3 = vcmask 1041408  }
 0x203   : > { %v3167_v57 = vld [vmem:[#allocation2 + $0x8] ss:$0 sps:$4 sm:$0xff]  }
 0x204   : > { %v745_v59 = vpop.permute.xlu0 %744 }
 0x205   : > { %v748_v60 = vsel %vm746_vm2, %v743_v48, %v745_v59  ;;  %755 = vst.msk [vmem:[#allocation3 + $0x10] sm:$0xc0] %vm3884_vm4, %v745_v59  ;;  %v852_v61 = vpop.permute.xlu1 %851 }
 0x206   : > { %753 = vst [vmem:[#allocation3 + $0x8] sm:$0xc0] %v748_v60  ;;  %861 = vst.msk [vmem:[#allocation3 + $0x28] sm:$0xc0] %vm3884_vm4, %v852_v61  ;;  %v888_v9 = vld [vmem:[#allocation3] sm:$0xff]  ;;  %vm903_vm4 = vcmask 293888  }
 0x207   : > { %v3168_v60 = vld [vmem:[#allocation2 + $0x8] ss:$0 sps:$4 sm:$0xff]  }
 0x208   : > { %v797_v62 = vpop.permute.xlu0 %796 }
 0x209   : > { %v802_v63 = vsel %vm800_vm5, %v797_v62, %v799_v58  ;;  %v795_v2 = vpop.permute.xlu1 %794 }
 0x20a   : > { %807 = vst [vmem:[#allocation3 + $0x20] sm:$0xc] %v802_v63  ;;  %v801_v3 = vsel %vm800_vm5, %v795_v2, %v797_v62  ;;  %v3170_v62 = vld [vmem:[#allocation2 + $0x8] ss:$0 sps:$4 sm:$0xff]  }
 0x20b   : > { %806 = vst [vmem:[#allocation3 + $0x18] sm:$0xc] %v801_v3  ;;  %v3171_v63 = vld [vmem:[#allocation2 + $0x8] ss:$0 sps:$4 sm:$0xff]  }
 0x20c   : > { %v850_v4 = vpop.permute.xlu0 %849  ;;  %v890_v5 = vld [vmem:[#allocation3 + $0x10] sm:$0xff]  ;;  %v3172_v2 = vld [vmem:[#allocation2 + $0x8] ss:$0 sps:$4 sm:$0xff]  }
 0x20d   : > { %v855_v6 = vsel %vm3895_vm6, %v850_v4, %v852_v61  ;;  %3052 = vmatpush3.bf16.msra.mxu1 %v890_v5  ;;  %v889_v7 = vld [vmem:[#allocation3 + $0x8] sm:$0xff]  ;;  %v848_v8 = vpop.permute.xlu1 %847  ;;  %v3169_v61 = vld [vmem:[#allocation2 + $0x8] ss:$0 sps:$4 sm:$0xff]  }
 0x20e   : > { %860 = vst [vmem:[#allocation3 + $0x20] sm:$0xc0] %v855_v6  ;;  %917 = vmatprep.subr.bf16.mxu0 %v889_v7  ;;  %3053 = vmatprep.subr.bf16.mxu1 %v3225_v0  ;;  %v854_v10 = vsel %vm3895_vm6, %v848_v8, %v850_v4  ;;  %v893_v12 = vld [vmem:[#allocation3 + $0x28] sm:$0xff]  ;;  %v3173_v3 = vld [vmem:[#allocation2 + $0x8] ss:$0 sps:$4 sm:$0xff]  }
 0x20f   : > { %918 = vmatpush1.bf16.msra.mxu0 %v888_v9  ;;  %859 = vst [vmem:[#allocation3 + $0x18] sm:$0xc0] %v854_v10  ;;  %v3174_v4 = vld [vmem:[#allocation2 + $0x8] ss:$0 sps:$4 sm:$0xff]   ;;  %v1258_v6 = vld [vmem:[%s3878_s9] sm:$0xf] }
 0x210   : > { %v877_v11 = vpop.permute.xlu0 %876  ;;  %v3175_v5 = vld [vmem:[#allocation2 + $0x8] ss:$0 sps:$4 sm:$0xff]  }
 0x211   : > { %886 = vst.msk [vmem:[#allocation3 + $0x40] sm:$0x3] %vm3885_vm10, %v877_v11  ;;  %3054 = vmatpush3.bf16.msra.mxu1 %v893_v12  ;;  %v875_v13 = vpop.permute.xlu1 %874 }
 0x212   : > { %3055 = vmatprep.subr.bf16.mxu1 %v3225_v0  ;;  %v879_v14 = vsel %vm3894_vm11, %v873_v53, %v875_v13  ;;  %v880_v15 = vsel %vm3894_vm11, %v875_v13, %v877_v11 }
 0x213   : > { %884 = vst [vmem:[#allocation3 + $0x30] sm:$0x3] %v879_v14  ;;  %885 = vst [vmem:[#allocation3 + $0x38] sm:$0x3] %v880_v15 }
 0x215   : > { %v892_v16 = vld [vmem:[#allocation3 + $0x20] sm:$0xff] }
 0x216   : > { %919 = vmatprep.subr.bf16.mxu0 %v892_v16  ;;  %v891_v17 = vld [vmem:[#allocation3 + $0x18] sm:$0xff] }
 0x217   : > { %920 = vmatpush1.bf16.msra.mxu0 %v891_v17 }
 0x218   : > { %v896_v20 = vld [vmem:[#allocation3 + $0x40] sm:$0x3] }
 0x219   : > { %v915_v21 = vsel %vm907_vm3, %v896_v20, 0 }
 0x21a   : > { %3056 = vmatpush3.bf16.msra.mxu1 %v915_v21  ;;  %v895_v24 = vld [vmem:[#allocation3 + $0x38] sm:$0x3]  ;;  %v894_v25 = vld [vmem:[#allocation3 + $0x30] sm:$0x3] }
 0x21b   : > { %3061 = vmatprep.subr.bf16.mxu1 %v3225_v0  ;;  %2861 = vmatprep.subr.msk.bf16.mxu0 %vm907_vm3, %v895_v24  ;;  %v909_v26 = vsel %vm907_vm3, %v894_v25, 0  ;;  %vm1027_vm3 = vcmask 1047558  }
 0x21c   : > { %922 = vmatpush1.bf16.msra.mxu0 %v909_v26 }
 0x21d   : > { %3058 = vmatmul.mubr.msk.bf16.vlgmr.msra.gmra.mrb[4].mxu1 %vm903_vm4, %v887_v23 }
 0x21e   : > { %3071 = vmatprep.mubr.msk.bf16.mxu1 %vm3887_vm0, %v3225_v0  ;;  %vm1047_vm0 = vcmask 257024  }
 0x21f   : > { %2862 = vmatmul.mubr.msk.bf16.vlgmr.msra.gmra.mrb[4].mxu0 %vm903_vm4, %v887_v23  ;;  %vm1026_vm4 = vcmask 1043610   ;;  %1048 = vst.msk [vmem:[#allocation3 + $0x10] sm:$0xf] %vm1047_vm0, %v3167_v57 }
 0x220   : > { %1309 = vmatprep.mubr.bf16.mxu0 %v3226_v1  ;;  %vm3442_vm10 = vmor %vm1027_vm3, %vm1026_vm4  ;;  %vm3890_vm4 = vcmask 261124   ;;  %vm1264_vm3 = vcmask 588800  }
 0x222   : > { %v901_v27 = vpop.permute.xlu1 %900 }
 0x2f0   : > { %v992_v28 = vpop.f32.mrb[4].mxu1 }
 0x2f1   : > { %v993_v29 = vadd.f32 %v992_v28, %v901_v27  ;;  %v3059_v30 = vpop.f32.mrb[5].mxu1 }
 0x2f2   : > { %v995_v31 = vpop.f32.mrb[6].mxu1  ;;  %v951_v33 = vpop.f32.mrb[4].mxu0 }
 0x2f3   : > { %v1000_v32 = vmax.f32 %v993_v29, 0.0  ;;  %v3060_v34 = vpop.f32.mrb[7].mxu1  ;;  %v952_v35 = vadd.f32 %v951_v33, %v901_v27  ;;  %v953_v36 = vpop.f32.mrb[5].mxu0 }
 0x2f4   : > { %v954_v37 = vadd.f32 %v953_v36, %v901_v27  ;;  %v955_v39 = vpop.f32.mrb[6].mxu0 }
 0x2f5   : > { %v1003_v40 = vmul.f32 %v1000_v32, %v3360_v19  ;;  %v998_v41 = vmax.f32 %v952_v35, 0.0  ;;  %v956_v42 = vpop.f32.mrb[7].mxu0 }
 0x2f6   : > { %v999_v43 = vmax.f32 %v954_v37, 0.0 }
 0x2f7   : > { %v3010_v44 = vpack.c.bf16 %v1003_v40, %v1003_v40  ;;  %v1001_v45 = vmul.f32 %v998_v41, %v3358_v18 }
 0x2f8   : > { %v1002_v46 = vmul.f32 %v999_v43, %v3362_v22 }
 0x2f9   : > { %v1016_v47 = vrot.slane %v3010_v44, 6 }
 0x2fa   : > { %v3009_v48 = vpack.c.bf16 %v1002_v46, %v1001_v45 }
 0x2fb   : > { %1019 = vrot.lane.b32.xlu1 %v1016_v47, %s3228_s25 }
 0x2fc   : > { %v1015_v49 = vrot.slane %v3009_v48, 6 }
 0x2fe   : > { %1017 = vrot.lane.b32.xlu0 %v1015_v49, %s3228_s25 }
 0x2ff   : > { %1063 = vrot.lane.b32.xlu1 %v3168_v60, %s3232_s15 }
 0x36d   : > { %v1020_v53 = vpop.permute.xlu1 %1019 }
 0x370   : > { %v1018_v50 = vpop.permute.xlu0 %1017 }
 0x371   : > { %v1021_v52 = vrot.slane %v1018_v50, 4  ;;  %v1064_v8 = vpop.permute.xlu1 %1063 }
 0x372   : > { %1073 = vst.msk [vmem:[#allocation3 + $0x10] sm:$0xf0] %vm3890_vm4, %v1064_v8 }
 0x373   : > { %v1022_v54 = vsel %vm491_vm7, %v1021_v52, %v1018_v50  ;;  %v1023_v55 = vsel %vm491_vm7, %v1021_v52, %v1020_v53 }
 0x374   : > { %1029 = vst.msk [vmem:[#allocation2] sm:$0xcc] %vm3442_vm10, %v1022_v54 }
 0x375   : > { %1031 = vst.msk [vmem:[#allocation2 + $0x8] sm:$0xc] %vm3889_vm9, %v1023_v55  ;;  %vm3900_vm9 = vmmov 0  }
 0x379   : > { %v1245_v16 = vld [vmem:[#allocation3 + $0x10] sm:$0xff] }
 0x37a   : > { %3062 = vmatpush3.bf16.msra.mxu1 %v1245_v16 }
 0x37b   : > { %v3451_v56 = vld [vmem:[#allocation2] sm:$0xff]  ;;  %3063 = vmatprep.subr.bf16.mxu1 %v3225_v0 }
 0x37c   : > { %v3455_v58 = vcombine.low %v3451_v56, %v3451_v56  ;;  %v3459_v59 = vcombine.high %v3451_v56, %v3451_v56 }
 0x37e   : > { %1045 = vst [vmem:[#allocation3] sm:$0xf] %v3455_v58  ;;  %1046 = vst [vmem:[#allocation3 + $0x8] sm:$0xf] %v3459_v59  ;;  %1061 = vrot.lane.b32.xlu0 %v3459_v59, %s3232_s15  ;;  %1086 = vrot.lane.b32.xlu1 %v3459_v59, %s3229_s26 }
 0x382   : > { %1059 = vrot.lane.b32.xlu0 %v3455_v58, %s3232_s15  ;;  %1110 = vrot.lane.b32.xlu1 %v3459_v59, %s3233_s16 }
 0x386   : > { %1088 = vrot.lane.b32.xlu0 %v3169_v61, %s3229_s26  ;;  %1084 = vrot.lane.b32.xlu1 %v3455_v58, %s3229_s26 }
 0x38a   : > { %1112 = vrot.lane.b32.xlu0 %v3170_v62, %s3233_s16  ;;  %1134 = vrot.lane.b32.xlu1 %v3459_v59, %s3230_s27 }
 0x38e   : > { %1108 = vrot.lane.b32.xlu0 %v3455_v58, %s3233_s16  ;;  %1158 = vrot.lane.b32.xlu1 %v3459_v59, %s3235_s18 }
 0x392   : > { %1136 = vrot.lane.b32.xlu0 %v3171_v63, %s3230_s27  ;;  %1132 = vrot.lane.b32.xlu1 %v3455_v58, %s3230_s27 }
 0x396   : > { %1160 = vrot.lane.b32.xlu0 %v3172_v2, %s3235_s18  ;;  %1182 = vrot.lane.b32.xlu1 %v3459_v59, %s3231_s28 }
 0x39a   : > { %1156 = vrot.lane.b32.xlu0 %v3455_v58, %s3235_s18  ;;  %1206 = vrot.lane.b32.xlu1 %v3459_v59, %s3236_s19 }
 0x39e   : > { %1184 = vrot.lane.b32.xlu0 %v3173_v3, %s3231_s28  ;;  %1180 = vrot.lane.b32.xlu1 %v3455_v58, %s3231_s28 }
 0x3a2   : > { %1208 = vrot.lane.b32.xlu0 %v3174_v4, %s3236_s19  ;;  %1228 = vrot.lane.b32.xlu1 %v3455_v58, %s3234_s17 }
 0x3a6   : > { %1204 = vrot.lane.b32.xlu0 %v3455_v58, %s3236_s19  ;;  %1232 = vrot.lane.b32.xlu1 %v3175_v5, %s3234_s17 }
 0x3aa   : > { %1230 = vrot.lane.b32.xlu0 %v3459_v59, %s3234_s17 }
 0x3ae   : > { %1261 = vperm.xlu0 %3133, %v1258_v6  }
 0x3f0   : > { %v1062_v7 = vpop.permute.xlu0 %1061  ;;  %v1087_v11 = vpop.permute.xlu1 %1086 }
 0x3f1   : > { %v1066_v9 = vsel %vm691_vm15, %v1062_v7, %v1064_v8 }
 0x3f2   : > { %1071 = vst [vmem:[#allocation3 + $0x8] sm:$0xf0] %v1066_v9 }
 0x3f4   : > { %v1060_v10 = vpop.permute.xlu0 %1059  ;;  %v1111_v14 = vpop.permute.xlu1 %1110 }
 0x3f5   : > { %v1065_v12 = vsel %vm691_vm15, %v1060_v10, %v1062_v7  ;;  %v1242_v10 = vld [vmem:[%s3874_s5] sm:$0x3] }
 0x3f6   : > { %1070 = vst [vmem:[#allocation3] sm:$0xf0] %v1065_v12 }
 0x3f8   : > { %v1089_v13 = vpop.permute.xlu0 %1088  ;;  %v1085_v21 = vpop.permute.xlu1 %1084 }
 0x3f9   : > { %v1091_v15 = vsel %vm717_vm12, %v1087_v11, %v1089_v13  ;;  %1097 = vst.msk [vmem:[#allocation3 + $0x28] sm:$0xf] %vm1047_vm0, %v1089_v13  ;;  %v1244_v17 = vld [vmem:[#allocation3 + $0x8] sm:$0xff]  ;;  %v1090_v25 = vsel %vm717_vm12, %v1085_v21, %v1087_v11 }
 0x3fa   : > { %1096 = vst [vmem:[#allocation3 + $0x20] sm:$0xf] %v1091_v15  ;;  %1277 = vmatprep.subr.bf16.mxu0 %v1244_v17  ;;  %1095 = vst [vmem:[#allocation3 + $0x18] sm:$0xf] %v1090_v25 }
 0x3fc   : > { %v1113_v20 = vpop.permute.xlu0 %1112  ;;  %v1135_v27 = vpop.permute.xlu1 %1134 }
 0x3fd   : > { %v1115_v23 = vsel %vm746_vm2, %v1111_v14, %v1113_v20  ;;  %1121 = vst.msk [vmem:[#allocation3 + $0x28] sm:$0xf0] %vm3890_vm4, %v1113_v20  ;;  %v1243_v24 = vld [vmem:[#allocation3] sm:$0xff] }
 0x3fe   : > { %1120 = vst [vmem:[#allocation3 + $0x20] sm:$0xf0] %v1115_v23  ;;  %1278 = vmatpush1.bf16.msra.mxu0 %v1243_v24 }
 0x400   : > { %v1109_v26 = vpop.permute.xlu0 %1108  ;;  %v1159_v31 = vpop.permute.xlu1 %1158 }
 0x401   : > { %v1114_v28 = vsel %vm746_vm2, %v1109_v26, %v1111_v14 }
 0x402   : > { %1119 = vst [vmem:[#allocation3 + $0x18] sm:$0xf0] %v1114_v28 }
 0x404   : > { %v1137_v29 = vpop.permute.xlu0 %1136  ;;  %v1248_v30 = vld [vmem:[#allocation3 + $0x28] sm:$0xff]  ;;  %v1133_v35 = vpop.permute.xlu1 %1132 }
 0x405   : > { %v1139_v32 = vsel %vm3891_vm13, %v1135_v27, %v1137_v29  ;;  %1145 = vst.msk [vmem:[#allocation3 + $0x40] sm:$0xf] %vm1047_vm0, %v1137_v29  ;;  %3064 = vmatpush3.bf16.msra.mxu1 %v1248_v30  ;;  %v1247_v33 = vld [vmem:[#allocation3 + $0x20] sm:$0xff]  ;;  %v1138_v39 = vsel %vm3891_vm13, %v1133_v35, %v1135_v27  ;;  %v3177_v35 = vld [vmem:[#allocation2 + $0x8] ss:$0 sps:$4 sm:$0xff]  }
 0x406   : > { %1144 = vst [vmem:[#allocation3 + $0x38] sm:$0xf] %v1139_v32  ;;  %1279 = vmatprep.subr.bf16.mxu0 %v1247_v33  ;;  %3065 = vmatprep.subr.bf16.mxu1 %v3225_v0  ;;  %1143 = vst [vmem:[#allocation3 + $0x30] sm:$0xf] %v1138_v39 }
 0x408   : > { %v1161_v34 = vpop.permute.xlu0 %1160  ;;  %v1183_v41 = vpop.permute.xlu1 %1182 }
 0x409   : > { %v1163_v36 = vsel %vm800_vm5, %v1159_v31, %v1161_v34  ;;  %1169 = vst.msk [vmem:[#allocation3 + $0x40] sm:$0xf0] %vm3890_vm4, %v1161_v34  ;;  %v1246_v37 = vld [vmem:[#allocation3 + $0x18] sm:$0xff] }
 0x40a   : > { %1168 = vst [vmem:[#allocation3 + $0x38] sm:$0xf0] %v1163_v36  ;;  %1280 = vmatpush1.bf16.msra.mxu0 %v1246_v37  ;;  %v3176_v34 = vld [vmem:[#allocation2 + $0x8] ss:$0 sps:$4 sm:$0xff]  }
 0x40c   : > { %v1157_v40 = vpop.permute.xlu0 %1156  ;;  %v1207_v45 = vpop.permute.xlu1 %1206 }
 0x40d   : > { %v1162_v42 = vsel %vm800_vm5, %v1157_v40, %v1159_v31 }
 0x40e   : > { %1167 = vst [vmem:[#allocation3 + $0x30] sm:$0xf0] %v1162_v42 }
 0x410   : > { %v1185_v43 = vpop.permute.xlu0 %1184  ;;  %v1251_v44 = vld [vmem:[#allocation3 + $0x40] sm:$0xff]  ;;  %v1181_v49 = vpop.permute.xlu1 %1180 }
 0x411   : > { %v1187_v46 = vsel %vm825_vm14, %v1183_v41, %v1185_v43  ;;  %1193 = vst.msk [vmem:[#allocation3 + $0x58] sm:$0xf] %vm1047_vm0, %v1185_v43  ;;  %3066 = vmatpush3.bf16.msra.mxu1 %v1251_v44  ;;  %v1250_v47 = vld [vmem:[#allocation3 + $0x38] sm:$0xff]  ;;  %v1186_v53 = vsel %vm825_vm14, %v1181_v49, %v1183_v41 }
 0x412   : > { %1192 = vst [vmem:[#allocation3 + $0x50] sm:$0xf] %v1187_v46  ;;  %1281 = vmatprep.subr.bf16.mxu0 %v1250_v47  ;;  %3067 = vmatprep.subr.bf16.mxu1 %v3225_v0  ;;  %1191 = vst [vmem:[#allocation3 + $0x48] sm:$0xf] %v1186_v53  ;;  %v1387_v46 = vld [vmem:[#allocation2 + $0x8] sm:$0xf] }
 0x414   : > { %v1209_v48 = vpop.permute.xlu0 %1208  ;;  %v1229_v55 = vpop.permute.xlu1 %1228 }
 0x415   : > { %v1211_v50 = vsel %vm3895_vm6, %v1207_v45, %v1209_v48  ;;  %1217 = vst.msk [vmem:[#allocation3 + $0x58] sm:$0xf0] %vm3890_vm4, %v1209_v48  ;;  %v1249_v52 = vld [vmem:[#allocation3 + $0x30] sm:$0xff] }
 0x416   : > { %1216 = vst [vmem:[#allocation3 + $0x50] sm:$0xf0] %v1211_v50  ;;  %1282 = vmatpush1.bf16.msra.mxu0 %v1249_v52 }
 0x418   : > { %v1205_v54 = vpop.permute.xlu0 %1204  ;;  %v1233_v62 = vpop.permute.xlu1 %1232 }
 0x419   : > { %v1210_v57 = vsel %vm3895_vm6, %v1205_v54, %v1207_v45  ;;  %1241 = vst.msk [vmem:[#allocation3 + $0x70] sm:$0xf] %vm1047_vm0, %v1233_v62 }
 0x41a   : > { %1215 = vst [vmem:[#allocation3 + $0x48] sm:$0xf0] %v1210_v57 }
 0x41c   : > { %v1231_v60 = vpop.permute.xlu0 %1230  ;;  %v1254_v61 = vld [vmem:[#allocation3 + $0x58] sm:$0xff] }
 0x41d   : > { %v1234_v63 = vsel %vm3894_vm11, %v1229_v55, %v1231_v60  ;;  %3068 = vmatpush3.bf16.msra.mxu1 %v1254_v61  ;;  %v1253_v2 = vld [vmem:[#allocation3 + $0x50] sm:$0xff]  ;;  %v1235_v3 = vsel %vm3894_vm11, %v1231_v60, %v1233_v62 }
 0x41e   : > { %1239 = vst [vmem:[#allocation3 + $0x60] sm:$0xf] %v1234_v63  ;;  %1283 = vmatprep.subr.bf16.mxu0 %v1253_v2  ;;  %3069 = vmatprep.subr.bf16.mxu1 %v3225_v0  ;;  %1240 = vst [vmem:[#allocation3 + $0x68] sm:$0xf] %v1235_v3 }
 0x420   : > { %v1257_v5 = vld [vmem:[#allocation3 + $0x70] sm:$0xf] }
 0x421   : > { %v1252_v4 = vld [vmem:[#allocation3 + $0x48] sm:$0xff]  ;;  %v1275_v8 = vsel %vm519_vm1, %v1257_v5, 0 }
 0x422   : > { %1284 = vmatpush1.bf16.msra.mxu0 %v1252_v4  ;;  %3070 = vmatpush3.bf16.msra.mxu1 %v1275_v8 }
 0x423   : > { %3075 = vmatprep.subr.bf16.mxu1 %v3225_v0 }
 0x425   : > { %v1255_v6 = vld [vmem:[#allocation3 + $0x60] sm:$0xf]  ;;  %v1256_v7 = vld [vmem:[#allocation3 + $0x68] sm:$0xf]  ;;  %3072 = vmatmul.mubr.msk.bf16.vlgmr.msra.gmra.mrb[8].mxu1 %vm1264_vm3, %v1242_v10 }
 0x426   : > { %v1269_v9 = vsel %vm519_vm1, %v1255_v6, 0  ;;  %2893 = vmatprep.subr.msk.bf16.mxu0 %vm519_vm1, %v1256_v7  ;;  %3089 = vmatprep.mubr.msk.bf16.mxu1 %vm3900_vm9, %v3225_v0  ;;  %vm3901_vm1 = vcmask 410624  }
 0x427   : > { %1286 = vmatpush1.bf16.msra.mxu0 %v1269_v9 }
 0x42a   : > { %2894 = vmatmul.mubr.msk.bf16.vlgmr.msra.gmra.mrb[8].mxu0 %vm1264_vm3, %v1242_v10  ;;  %vm1408_vm3 = vcmask 259072  }
 0x42b   : > { %1785 = vmatprep.mubr.bf16.mxu0 %v3226_v1 }
 0x42d   : > { %v1262_v11 = vpop.permute.xlu0 %1261 }
 0x4f8   : > { %v1352_v12 = vpop.f32.mrb[8].mxu1 }
 0x4f9   : > { %v1353_v13 = vadd.f32 %v1352_v12, %v1262_v11  ;;  %v3073_v15 = vpop.f32.mrb[9].mxu1 }
 0x4fa   : > { %v1355_v20 = vpop.f32.mrb[10].mxu1 }
 0x4fb   : > { %v1360_v21 = vmax.f32 %v1353_v13, 0.0  ;;  %v3074_v25 = vpop.f32.mrb[11].mxu1 }
 0x4fd   : > { %v1311_v14 = vpop.f32.mrb[8].mxu0  ;;  %v1363_v28 = vmul.f32 %v1360_v21, %v3360_v19 }
 0x4fe   : > { %v1312_v16 = vadd.f32 %v1311_v14, %v1262_v11  ;;  %v1313_v17 = vpop.f32.mrb[9].mxu0 }
 0x4ff   : > { %v1314_v23 = vadd.f32 %v1313_v17, %v1262_v11  ;;  %v1315_v24 = vpop.f32.mrb[10].mxu0  ;;  %v3012_v31 = vpack.c.bf16 %v1363_v28, %v1363_v28 }
 0x500   : > { %v1358_v26 = vmax.f32 %v1312_v16, 0.0  ;;  %v1316_v27 = vpop.f32.mrb[11].mxu0 }
 0x501   : > { %v1359_v29 = vmax.f32 %v1314_v23, 0.0  ;;  %1377 = vrot.lane.b32.xlu0 %v3012_v31, %s3228_s25 }
 0x502   : > { %v1361_v30 = vmul.f32 %v1358_v26, %v3358_v18 }
 0x503   : > { %v1362_v32 = vmul.f32 %v1359_v29, %v3362_v22 }
 0x505   : > { %v3011_v33 = vpack.c.bf16 %v1362_v32, %v1361_v30  ;;  %1469 = vrot.lane.b32.xlu0 %v3459_v59, %s3229_s26 }
 0x507   : > { %1375 = vrot.lane.b32.xlu1 %v3011_v33, %s3228_s25 }
 0x509   : > { %1467 = vrot.lane.b32.xlu0 %v3455_v58, %s3229_s26 }
 0x50b   : > { %1471 = vrot.lane.b32.xlu1 %v3176_v34, %s3229_s26 }
 0x50d   : > { %1622 = vrot.lane.b32.xlu0 %v3177_v35, %s3231_s28 }
 0x50f   : > { %1620 = vrot.lane.b32.xlu1 %v3459_v59, %s3231_s28 }
 0x513   : > { %1618 = vrot.lane.b32.xlu1 %v3455_v58, %s3231_s28 }
 0x573   : > { %v1378_v36 = vpop.permute.xlu0 %1377 }
 0x577   : > { %v1470_v40 = vpop.permute.xlu0 %1469 }
 0x579   : > { %v1376_v37 = vpop.permute.xlu1 %1375 }
 0x57a   : > { %v1379_v39 = vrot.slane %v1376_v37, 4 }
 0x57b   : > { %v1468_v58 = vpop.permute.xlu0 %1467 }
 0x57c   : > { %v1380_v41 = vsel %vm491_vm7, %v1379_v39, %v1376_v37  ;;  %v1381_v42 = vsel %vm491_vm7, %v1379_v39, %v1378_v36  ;;  %v1479_v44 = vsel %vm717_vm12, %v1468_v58, %v1470_v40 }
 0x57d   : > { %1384 = vst.msk [vmem:[#allocation2 + $0xc] sm:$0x33] %vm3369_vm8, %v1380_v41  ;;  %v1472_v59 = vpop.permute.xlu1 %1471  ;;  %1489 = vst [vmem:[#allocation3 + $0x18] sm:$0xf0] %v1479_v44  ;;  %v1733_v44 = vld [vmem:[%s3879_s10] sm:$0xf] }
 0x57e   : > { %1385 = vst.msk [vmem:[#allocation2 + $0x14] sm:$0x3] %vm3901_vm1, %v1381_v42  ;;  %v1480_v43 = vsel %vm717_vm12, %v1470_v40, %v1472_v59  ;;  %vm3902_vm1 = vcmask 254976  }
 0x57f   : > { %1491 = vst.msk [vmem:[#allocation3 + $0x28] sm:$0xf0] %vm3890_vm4, %v1472_v59  ;;  %1490 = vst [vmem:[#allocation3 + $0x20] sm:$0xf0] %v1480_v43  ;;  %v1623_v47 = vpop.permute.xlu0 %1622 }
 0x580   : > { %1642 = vst.msk [vmem:[#allocation3 + $0x70] sm:$0xf0] %vm3890_vm4, %v1623_v47  ;;  %vm3903_vm4 = vcmask 261126  }
 0x581   : > { %v1621_v45 = vpop.permute.xlu1 %1620 }
 0x582   : > { %v1631_v50 = vsel %vm825_vm14, %v1621_v45, %v1623_v47 }
 0x583   : > { %1641 = vst [vmem:[#allocation3 + $0x68] sm:$0xf0] %v1631_v50 }
 0x584   : > { %v1388_v48 = vld [vmem:[#allocation2 + $0xc] sm:$0x33] }
 0x585   : > { %v1389_v49 = vld [vmem:[#allocation2 + $0x14] sm:$0x3]  ;;  %v2898_v52 = vcombine.low %v3451_v56, %v1388_v48  ;;  %v2899_v53 = vcombine.high %v3451_v56, %v1388_v48  ;;  %v1619_v55 = vpop.permute.xlu1 %1618  ;;  %v1449_v60 = vld [vmem:[#allocation2 + $0xc] sm:$0x33] }
 0x586   : > { %v2900_v54 = vcombine.low %v1387_v46, %v1389_v49  ;;  %v3178_v57 = vld [vmem:[#allocation2 + $0x14] ss:$0 sps:$4 sm:$0x33]   ;;  %v1630_v61 = vsel %vm825_vm14, %v1619_v55, %v1621_v45  ;;  %v2908_v62 = vcombine.high %v1449_v60, %v1449_v60  ;;  %v2907_v2 = vcombine.low %v1449_v60, %v1449_v60  ;;  %v1600_v3 = vld [vmem:[#allocation2 + $0xc] sm:$0x33] }
 0x587   : > { %1406 = vst [vmem:[#allocation3] sm:$0x3f] %v2898_v52  ;;  %1407 = vst [vmem:[#allocation3 + $0x8] sm:$0x3f] %v2899_v53  ;;  %1477 = vrot.lane.b32.xlu0 %v3178_v57, %s3229_s26  ;;  %v1532_v4 = vld [vmem:[#allocation2 + $0xc] sm:$0x33]  ;;  %v2923_v5 = vcombine.high %v1600_v3, %v1600_v3  ;;  %v2922_v12 = vcombine.low %v1600_v3, %v1600_v3 }
 0x588   : > { %1640 = vst [vmem:[#allocation3 + $0x60] sm:$0xf0] %v1630_v61  ;;  %1409 = vst.msk [vmem:[#allocation3 + $0x10] sm:$0x3f] %vm1408_vm3, %v2900_v54  ;;  %1475 = vrot.lane.b32.xlu1 %v2908_v62, %s3229_s26  ;;  %v2914_v7 = vcombine.high %v3451_v56, %v1532_v4  ;;  %v1412_v8 = vld [vmem:[#allocation2 + $0xc] sm:$0x33]  ;;  %v2913_v10 = vcombine.low %v3451_v56, %v1532_v4 }
 0x589   : > { %v3180_v63 = vld [vmem:[#allocation2 + $0x8] ss:$12 sps:$4 sm:$0x3f]   ;;  %v2902_v11 = vcombine.high %v3451_v56, %v1412_v8  ;;  %v2901_v15 = vcombine.low %v3451_v56, %v1412_v8  ;;  %v1497_v16 = vld [vmem:[#allocation2 + $0xc] sm:$0x33] }
 0x58a   : > { %v3183_v6 = vld [vmem:[#allocation2 + $0x8] ss:$12 sps:$4 sm:$0x3f]   ;;  %v2910_v20 = vcombine.low %v3451_v56, %v1497_v16  ;;  %v2911_v26 = vcombine.high %v3451_v56, %v1497_v16  ;;  %v1563_v27 = vld [vmem:[#allocation2 + $0xc] sm:$0x33] }
 0x58b   : > { %1551 = vrot.lane.b32.xlu0 %v3180_v63, %s3230_s27  ;;  %v1429_v9 = vrot.slane %v3183_v6, 2  ;;  %v3185_v13 = vld [vmem:[#allocation2 + $0x8] ss:$12 sps:$4 sm:$0x3f]   ;;  %v1428_v14 = vrot.slane %v2902_v11, 2  ;;  %v1427_v21 = vrot.slane %v2901_v15, 2  ;;  %v2916_v29 = vcombine.low %v3451_v56, %v1563_v27 }
 0x58c   : > { %1473 = vrot.lane.b32.xlu1 %v2907_v2, %s3229_s26  ;;  %v1514_v17 = vrot.slane %v3185_v13, 6  ;;  %v1512_v23 = vrot.slane %v2910_v20, 6  ;;  %v3187_v24 = vld [vmem:[#allocation2 + $0x8] ss:$12 sps:$4 sm:$0x3f]   ;;  %v1513_v30 = vrot.slane %v2911_v26, 6  ;;  %v2917_v31 = vcombine.high %v3451_v56, %v1563_v27 }
 0x58d   : > { %v3186_v25 = vld [vmem:[#allocation2 + $0x14] ss:$0 sps:$4 sm:$0x33]   ;;  %v1580_v28 = vrot.slane %v3187_v24, 2  ;;  %v1578_v32 = vrot.slane %v2916_v29, 2 }
 0x58e   : > { %v1682_v33 = vld [vmem:[#allocation2 + $0xc] sm:$0x33]  ;;  %v1579_v34 = vrot.slane %v2917_v31, 2  ;;  %v3188_v35 = vld [vmem:[#allocation2 + $0x8] ss:$12 sps:$4 sm:$0x3f]  }
 0x58f   : > { %1626 = vrot.lane.b32.xlu0 %v2923_v5, %s3231_s28  ;;  %v1648_v36 = vld [vmem:[#allocation2 + $0xc] sm:$0x33]  ;;  %v2928_v37 = vcombine.low %v3451_v56, %v1682_v33  ;;  %v1665_v40 = vrot.slane %v3188_v35, 6  ;;  %v3189_v43 = vld [vmem:[#allocation2 + $0x8] ss:$12 sps:$4 sm:$0x3f]   ;;  %v2929_v58 = vcombine.high %v3451_v56, %v1682_v33 }
 0x590   : > { %1549 = vrot.lane.b32.xlu1 %v2914_v7, %s3230_s27  ;;  %v2926_v39 = vcombine.high %v3451_v56, %v1648_v36  ;;  %v2925_v41 = vcombine.low %v3451_v56, %v1648_v36 }
 0x592   : > { %v1664_v42 = vrot.slane %v2926_v39, 6  ;;  %v1663_v59 = vrot.slane %v2925_v41, 6 }
 0x593   : > { %1434 = vrot.lane.b32.xlu0 %v1429_v9, %s3232_s15 }
 0x594   : > { %1547 = vrot.lane.b32.xlu1 %v2913_v10, %s3230_s27 }
 0x597   : > { %1624 = vrot.lane.b32.xlu0 %v2922_v12, %s3231_s28 }
 0x598   : > { %1432 = vrot.lane.b32.xlu1 %v1428_v14, %s3232_s15 }
 0x59b   : > { %1519 = vrot.lane.b32.xlu0 %v1514_v17, %s3233_s16 }
 0x59c   : > { %1430 = vrot.lane.b32.xlu1 %v1427_v21, %s3232_s15 }
 0x59f   : > { %1515 = vrot.lane.b32.xlu0 %v1512_v23, %s3233_s16 }
 0x5a0   : > { %1628 = vrot.lane.b32.xlu1 %v3186_v25, %s3231_s28 }
 0x5a3   : > { %1585 = vrot.lane.b32.xlu0 %v1580_v28, %s3235_s18 }
 0x5a4   : > { %1517 = vrot.lane.b32.xlu1 %v1513_v30, %s3233_s16 }
 0x5a7   : > { %1581 = vrot.lane.b32.xlu0 %v1578_v32, %s3235_s18 }
 0x5a8   : > { %1583 = vrot.lane.b32.xlu1 %v1579_v34, %s3235_s18 }
 0x5ab   : > { %1697 = vrot.lane.b32.xlu0 %v2928_v37, %s3234_s17 }
 0x5ac   : > { %1670 = vrot.lane.b32.xlu1 %v1665_v40, %s3236_s19 }
 0x5af   : > { %1668 = vrot.lane.b32.xlu0 %v1664_v42, %s3236_s19 }
 0x5b0   : > { %1666 = vrot.lane.b32.xlu1 %v1663_v59, %s3236_s19 }
 0x5b3   : > { %1701 = vrot.lane.b32.xlu0 %v3189_v43, %s3234_s17 }
 0x5b4   : > { %1699 = vrot.lane.b32.xlu1 %v2929_v58, %s3234_s17 }
 0x5b8   : > { %1736 = vperm.xlu1 %3134, %v1733_v44  }
 0x5f9   : > { %v1478_v45 = vpop.permute.xlu0 %1477 }
 0x5fa   : > { %1494 = vst.msk [vmem:[#allocation3 + $0x40] sm:$0x3] %vm3902_vm1, %v1478_v45  ;;  %v1476_v46 = vpop.permute.xlu1 %1475  ;;  %vm1528_vm1 = vcmask 261122  }
 0x5fb   : > { %v1482_v47 = vsel %vm717_vm12, %v1476_v46, %v1478_v45 }
 0x5fc   : > { %1493 = vst [vmem:[#allocation3 + $0x38] sm:$0x3] %v1482_v47 }
 0x5fd   : > { %v1552_v48 = vpop.permute.xlu0 %1551 }
 0x5fe   : > { %1560 = vst.msk [vmem:[#allocation3 + $0x58] sm:$0x3f] %vm1408_vm3, %v1552_v48  ;;  %v1474_v49 = vpop.permute.xlu1 %1473 }
 0x5ff   : > { %v1481_v50 = vsel %vm717_vm12, %v1474_v49, %v1476_v46 }
 0x600   : > { %1492 = vst [vmem:[#allocation3 + $0x30] sm:$0x3] %v1481_v50 }
 0x601   : > { %v1627_v52 = vpop.permute.xlu0 %1626 }
 0x602   : > { %v1550_v53 = vpop.permute.xlu1 %1549 }
 0x603   : > { %v1554_v54 = vsel %vm3891_vm13, %v1550_v53, %v1552_v48 }
 0x604   : > { %1559 = vst [vmem:[#allocation3 + $0x50] sm:$0x3f] %v1554_v54 }
 0x605   : > { %v1435_v55 = vpop.permute.xlu0 %1434 }
 0x606   : > { %1443 = vst.msk [vmem:[#allocation3 + $0x10] sm:$0xc0] %vm3903_vm4, %v1435_v55  ;;  %v1548_v57 = vpop.permute.xlu1 %1547  ;;  %vm3904_vm4 = vcmask 254976  }
 0x607   : > { %1446 = vst.msk [vmem:[#allocation3 + $0x28] sm:$0xf] %vm1047_vm0, %v1435_v55  ;;  %v1553_v60 = vsel %vm3891_vm13, %v1548_v57, %v1550_v53  ;;  %vm3905_vm13 = vcmask 261126  }
 0x608   : > { %1558 = vst [vmem:[#allocation3 + $0x48] sm:$0x3f] %v1553_v60 }
 0x609   : > { %v1625_v61 = vpop.permute.xlu0 %1624 }
 0x60a   : > { %v1632_v62 = vsel %vm825_vm14, %v1625_v61, %v1627_v52  ;;  %v1433_v63 = vpop.permute.xlu1 %1432 }
 0x60b   : > { %1643 = vst [vmem:[#allocation3 + $0x78] sm:$0x3] %v1632_v62  ;;  %v1437_v2 = vsel %vm691_vm15, %v1433_v63, %v1435_v55 }
 0x60c   : > { %1442 = vst [vmem:[#allocation3 + $0x20] ss:$-20 sps:$4 sm:$0xcf] %v1437_v2  }
 0x60d   : > { %v1520_v3 = vpop.permute.xlu0 %1519  ;;  %v1714_v4 = vld [vmem:[#allocation3 + $0x10] sm:$0xff] }
 0x60e   : > { %1529 = vst.msk [vmem:[#allocation3 + $0x40] sm:$0xfc] %vm1528_vm1, %v1520_v3  ;;  %v1431_v5 = vpop.permute.xlu1 %1430  ;;  %3076 = vmatpush3.bf16.msra.mxu1 %v1714_v4  ;;  %v1717_v8 = vld [vmem:[#allocation3 + $0x28] sm:$0xff] }
 0x60f   : > { %v1436_v6 = vsel %vm691_vm15, %v1431_v5, %v1433_v63  ;;  %3077 = vmatprep.subr.bf16.mxu1 %v3225_v0 }
 0x610   : > { %1441 = vst [vmem:[#allocation3 + $0x18] ss:$-20 sps:$4 sm:$0xcf] %v1436_v6  }
 0x611   : > { %v1516_v7 = vpop.permute.xlu0 %1515 }
 0x612   : > { %v1629_v9 = vpop.permute.xlu1 %1628  ;;  %3078 = vmatpush3.bf16.msra.mxu1 %v1717_v8 }
 0x613   : > { %v1633_v10 = vsel %vm825_vm14, %v1627_v52, %v1629_v9  ;;  %1645 = vst.msk [vmem:[#allocation3 + $0x88] sm:$0x3] %vm3904_vm4, %v1629_v9  ;;  %v1713_v11 = vld [vmem:[#allocation3 + $0x8] sm:$0xff]  ;;  %3079 = vmatprep.subr.bf16.mxu1 %v3225_v0  ;;  %v1716_v20 = vld [vmem:[#allocation3 + $0x20] sm:$0xff]  ;;  %v1711_v52 = vld [vmem:[%s3875_s6] sm:$0x3] }
 0x614   : > { %1644 = vst [vmem:[#allocation3 + $0x80] sm:$0x3] %v1633_v10  ;;  %1753 = vmatprep.subr.bf16.mxu0 %v1713_v11  ;;  %vm3906_vm4 = vcmask 412674  }
 0x615   : > { %v1586_v12 = vpop.permute.xlu0 %1585  ;;  %v1720_v13 = vld [vmem:[#allocation3 + $0x40] sm:$0xff] }
 0x616   : > { %1594 = vst.msk [vmem:[#allocation3 + $0x58] sm:$0xc0] %vm3905_vm13, %v1586_v12  ;;  %v1518_v14 = vpop.permute.xlu1 %1517  ;;  %3080 = vmatpush3.bf16.msra.mxu1 %v1720_v13  ;;  %vm3892_vm13 = vcmask 1045504  }
 0x617   : > { %1597 = vst.msk [vmem:[#allocation3 + $0x70] sm:$0xf] %vm1047_vm0, %v1586_v12  ;;  %v1521_v15 = vsel %vm746_vm2, %v1516_v7, %v1518_v14  ;;  %v1522_v16 = vsel %vm746_vm2, %v1518_v14, %v1520_v3  ;;  %v1712_v17 = vld [vmem:[#allocation3] sm:$0xff]  ;;  %3081 = vmatprep.subr.bf16.mxu1 %v3225_v0  ;;  %v1715_v26 = vld [vmem:[#allocation3 + $0x18] sm:$0xff] }
 0x618   : > { %1526 = vst [vmem:[#allocation3 + $0x30] sm:$0xfc] %v1521_v15  ;;  %1527 = vst [vmem:[#allocation3 + $0x38] sm:$0xfc] %v1522_v16  ;;  %1754 = vmatpush1.bf16.msra.mxu0 %v1712_v17 }
 0x619   : > { %1755 = vmatprep.subr.bf16.mxu0 %v1716_v20  ;;  %v1582_v21 = vpop.permute.xlu0 %1581 }
 0x61a   : > { %v1584_v23 = vpop.permute.xlu1 %1583 }
 0x61b   : > { %v1587_v24 = vsel %vm800_vm5, %v1582_v21, %v1584_v23  ;;  %v1588_v25 = vsel %vm800_vm5, %v1584_v23, %v1586_v12 }
 0x61c   : > { %1592 = vst [vmem:[#allocation3 + $0x60] ss:$-20 sps:$4 sm:$0xcf] %v1587_v24   ;;  %1593 = vst [vmem:[#allocation3 + $0x68] ss:$-20 sps:$4 sm:$0xcf] %v1588_v25   ;;  %1756 = vmatpush1.bf16.msra.mxu0 %v1715_v26 }
 0x61d   : > { %v1698_v27 = vpop.permute.xlu0 %1697  ;;  %v1723_v28 = vld [vmem:[#allocation3 + $0x58] sm:$0xff]  ;;  %v1888_v26 = vld [vmem:[#allocation2] sm:$0xff] }
 0x61e   : > { %v1671_v29 = vpop.permute.xlu1 %1670  ;;  %3082 = vmatpush3.bf16.msra.mxu1 %v1723_v28  ;;  %v1726_v33 = vld [vmem:[#allocation3 + $0x70] sm:$0xff]  ;;  %v1865_v25 = vld [vmem:[#allocation2 + $0x8] sm:$0xf] }
 0x61f   : > { %1679 = vst.msk [vmem:[#allocation3 + $0x88] sm:$0xfc] %vm1528_vm1, %v1671_v29  ;;  %v1719_v30 = vld [vmem:[#allocation3 + $0x38] sm:$0xff]  ;;  %v1718_v31 = vld [vmem:[#allocation3 + $0x30] sm:$0xff]  ;;  %3083 = vmatprep.subr.bf16.mxu1 %v3225_v0 }
 0x620   : > { %1757 = vmatprep.subr.bf16.mxu0 %v1719_v30 }
 0x621   : > { %1758 = vmatpush1.bf16.msra.mxu0 %v1718_v31  ;;  %v1669_v32 = vpop.permute.xlu0 %1668 }
 0x622   : > { %v1673_v34 = vsel %vm3895_vm6, %v1669_v32, %v1671_v29  ;;  %v1667_v35 = vpop.permute.xlu1 %1666  ;;  %3084 = vmatpush3.bf16.msra.mxu1 %v1726_v33 }
 0x623   : > { %1678 = vst [vmem:[#allocation3 + $0x80] sm:$0xfc] %v1673_v34  ;;  %v1672_v36 = vsel %vm3895_vm6, %v1667_v35, %v1669_v32  ;;  %v1722_v37 = vld [vmem:[#allocation3 + $0x50] sm:$0xff]  ;;  %v1721_v39 = vld [vmem:[#allocation3 + $0x48] sm:$0xff]  ;;  %3085 = vmatprep.subr.bf16.mxu1 %v3225_v0  ;;  %v1724_v44 = vld [vmem:[#allocation3 + $0x60] sm:$0xff] }
 0x624   : > { %1677 = vst [vmem:[#allocation3 + $0x78] sm:$0xfc] %v1672_v36  ;;  %1759 = vmatprep.subr.bf16.mxu0 %v1722_v37  ;;  %v1725_v41 = vld [vmem:[#allocation3 + $0x68] sm:$0xff] }
 0x625   : > { %1760 = vmatpush1.bf16.msra.mxu0 %v1721_v39  ;;  %v1702_v40 = vpop.permute.xlu0 %1701 }
 0x626   : > { %1710 = vst.msk [vmem:[#allocation3 + $0xa0] sm:$0x3f] %vm1408_vm3, %v1702_v40  ;;  %1761 = vmatprep.subr.bf16.mxu0 %v1725_v41  ;;  %v1700_v42 = vpop.permute.xlu1 %1699  ;;  %v1729_v59 = vld [vmem:[#allocation3 + $0x88] sm:$0xff] }
 0x627   : > { %v1703_v43 = vsel %vm3894_vm11, %v1698_v27, %v1700_v42  ;;  %v1704_v58 = vsel %vm3894_vm11, %v1700_v42, %v1702_v40  ;;  %3086 = vmatpush3.bf16.msra.mxu1 %v1729_v59  ;;  %v3692_v41 = vld.sshfl [vmem:[%s3876_s7] sm:$0x33 pattern:$0x76325410] }
 0x628   : > { %1708 = vst [vmem:[#allocation3 + $0x90] sm:$0x3f] %v1703_v43  ;;  %1709 = vst [vmem:[#allocation3 + $0x98] sm:$0x3f] %v1704_v58  ;;  %3087 = vmatprep.subr.bf16.mxu1 %v3225_v0  ;;  %v2178_v42 = vcombine.high %v3692_v41, %v3692_v41  ;;  %v2164_v43 = vld [vmem:[%s3880_s11] sm:$0xf] }
 0x629   : > { %1762 = vmatpush1.bf16.msra.mxu0 %v1724_v44  ;;  %v3215_v58 = vld [vmem:[%s3335_s20] sm:$0xff]  ;;  %v3216_v44 = vld [vmem:[%s3335_s20 + $0x8] sm:$0xf] }
 0x62a   : > { %v1728_v45 = vld [vmem:[#allocation3 + $0x80] sm:$0xff] }
 0x62b   : > { %1763 = vmatprep.subr.bf16.mxu0 %v1728_v45  ;;  %v1727_v46 = vld [vmem:[#allocation3 + $0x78] sm:$0xff] }
 0x62d   : > { %1764 = vmatpush1.bf16.msra.mxu0 %v1727_v46  ;;  %v1732_v47 = vld [vmem:[#allocation3 + $0xa0] sm:$0x3f] }
 0x62e   : > { %v1751_v48 = vsel %vm3892_vm13, %v1732_v47, 0 }
 0x62f   : > { %v1731_v49 = vld [vmem:[#allocation3 + $0x98] sm:$0x3f]  ;;  %3088 = vmatpush3.bf16.msra.mxu1 %v1751_v48  ;;  %v1730_v50 = vld [vmem:[#allocation3 + $0x90] sm:$0x3f] }
 0x630   : > { %2931 = vmatprep.subr.msk.bf16.mxu0 %vm3892_vm13, %v1731_v49  ;;  %v1745_v53 = vsel %vm3892_vm13, %v1730_v50, 0  ;;  %2225 = vmatprep.subr.bf16.mxu1 %v3226_v1  ;;  %vm3893_vm13 = vcmask 261120  }
 0x631   : > { %1766 = vmatpush1.bf16.msra.mxu0 %v1745_v53 }
 0x632   : > { %3090 = vmatmul.mubr.msk.bf16.vlgmr.msra.gmra.mrb[12].mxu1 %vm800_vm5, %v1711_v52 }
 0x634   : > { %2932 = vmatmul.mubr.msk.bf16.vlgmr.msra.gmra.mrb[12].mxu0 %vm800_vm5, %v1711_v52 }
 0x637   : > { %v1737_v54 = vpop.permute.xlu1 %1736 }
 0x705   : > { %v1828_v55 = vpop.f32.mrb[12].mxu1 }
 0x706   : > { %v1829_v57 = vadd.f32 %v1828_v55, %v1737_v54  ;;  %v3091_v60 = vpop.f32.mrb[13].mxu1 }
 0x707   : > { %v1787_v61 = vpop.f32.mrb[12].mxu0  ;;  %v1831_v62 = vpop.f32.mrb[14].mxu1 }
 0x708   : > { %v1836_v63 = vmax.f32 %v1829_v57, 0.0  ;;  %v1788_v2 = vadd.f32 %v1787_v61, %v1737_v54  ;;  %v1789_v3 = vpop.f32.mrb[13].mxu0  ;;  %v3092_v4 = vpop.f32.mrb[15].mxu1 }
 0x709   : > { %v1790_v5 = vadd.f32 %v1789_v3, %v1737_v54  ;;  %v1791_v6 = vpop.f32.mrb[14].mxu0 }
 0x70a   : > { %v1839_v7 = vmul.f32 %v1836_v63, %v3360_v19  ;;  %v1834_v8 = vmax.f32 %v1788_v2, 0.0  ;;  %v1792_v9 = vpop.f32.mrb[15].mxu0 }
 0x70b   : > { %v1835_v10 = vmax.f32 %v1790_v5, 0.0 }
 0x70c   : > { %v3014_v11 = vpack.c.bf16 %v1839_v7, %v1839_v7  ;;  %v1837_v12 = vmul.f32 %v1834_v8, %v3358_v18 }
 0x70d   : > { %v1838_v13 = vmul.f32 %v1835_v10, %v3362_v22 }
 0x70e   : > { %v1852_v14 = vrot.slane %v3014_v11, 6 }
 0x70f   : > { %v3013_v15 = vpack.c.bf16 %v1838_v13, %v1837_v12 }
 0x710   : > { %1855 = vrot.lane.b32.xlu1 %v1852_v14, %s3228_s25 }
 0x711   : > { %v1851_v16 = vrot.slane %v3013_v15, 6 }
 0x713   : > { %1853 = vrot.lane.b32.xlu0 %v1851_v16, %s3228_s25 }
 0x782   : > { %v1856_v21 = vpop.permute.xlu1 %1855 }
 0x785   : > { %v1854_v17 = vpop.permute.xlu0 %1853 }
 0x786   : > { %v1857_v20 = vrot.slane %v1854_v17, 4 }
 0x788   : > { %v1858_v23 = vsel %vm491_vm7, %v1857_v20, %v1854_v17  ;;  %v1859_v24 = vsel %vm491_vm7, %v1857_v20, %v1856_v21 }
 0x789   : > { %1862 = vst.msk [vmem:[#allocation2 + $0xc] sm:$0xcc] %vm3442_vm10, %v1858_v23  ;;  %vm2180_vm10 = vcmask 130048  }
 0x78a   : > { %1863 = vst.msk [vmem:[#allocation2 + $0x14] sm:$0xc] %vm3906_vm4, %v1859_v24  ;;  %2965 = vmatprep.mubr.msk.bf16.mxu1 %vm2180_vm10, %v2178_v42  ;;  %2964 = vmatprep.mubr.msk.bf16.mxu0 %vm2180_vm10, %v2178_v42  ;;  %vm3907_vm4 = vcmask 891904  }
 0x78b   : > { %vm3908_vm10 = vmmov %vm3907_vm4 }
 0x790   : > { %v1866_v27 = vld [vmem:[#allocation2 + $0xc] sm:$0xff] }
 0x791   : > { %v1867_v28 = vld [vmem:[#allocation2 + $0x14] sm:$0xf]  ;;  %v2936_v29 = vcombine.low %v3451_v56, %v1866_v27  ;;  %v2937_v30 = vcombine.high %v3451_v56, %v1866_v27  ;;  %v2940_v33 = vcombine.high %v1888_v26, %v1866_v27  ;;  %v2939_v51 = vcombine.low %v1888_v26, %v1866_v27 }
 0x792   : > { %v2938_v31 = vcombine.low %v1865_v25, %v1867_v28  ;;  %v3190_v32 = vld [vmem:[#allocation2 + $0x8] ss:$12 sps:$4 sm:$0xff]  }
 0x793   : > { %1884 = vst [vmem:[#allocation3] sm:$0xff] %v2936_v29  ;;  %1885 = vst [vmem:[#allocation3 + $0x8] sm:$0xff] %v2937_v30  ;;  %1909 = vrot.lane.b32.xlu1 %v3190_v32, %s3232_s15  ;;  %1907 = vrot.lane.b32.xlu0 %v2940_v33, %s3232_s15  ;;  %v3193_v56 = vld [vmem:[#allocation2 + $0x8] ss:$12 sps:$4 sm:$0xff]  }
 0x794   : > { %1887 = vst.msk [vmem:[#allocation3 + $0x10] sm:$0xff] %vm3893_vm13, %v2938_v31  ;;  %2184 = vmatprep.subr.bf16.mxu0 %v2937_v30  ;;  %v3194_v35 = vld [vmem:[#allocation2 + $0x8] ss:$12 sps:$4 sm:$0xff]  }
 0x795   : > { %2185 = vmatpush1.bf16.msra.mxu0 %v2936_v29  ;;  %v3195_v36 = vld [vmem:[#allocation2 + $0x8] ss:$12 sps:$4 sm:$0xff]  }
 0x796   : > { %v3196_v37 = vld [vmem:[#allocation2 + $0x8] ss:$12 sps:$4 sm:$0xff]  }
 0x797   : > { %1938 = vrot.lane.b32.xlu1 %v2940_v33, %s3229_s26  ;;  %1905 = vrot.lane.b32.xlu0 %v2939_v51, %s3232_s15  ;;  %v3197_v39 = vld [vmem:[#allocation2 + $0x8] ss:$12 sps:$4 sm:$0xff]  }
 0x798   : > { %v3198_v40 = vld [vmem:[#allocation2 + $0x8] ss:$12 sps:$4 sm:$0xff]  }
 0x799   : > { %v3199_v59 = vld [vmem:[#allocation2 + $0x8] ss:$12 sps:$4 sm:$0xff]  }
 0x79b   : > { %v2139_v34 = vld [vmem:[#allocation3 + $0x10] sm:$0xff]  ;;  %1936 = vrot.lane.b32.xlu1 %v2939_v51, %s3229_s26  ;;  %1940 = vrot.lane.b32.xlu0 %v3193_v56, %s3229_s26 }
 0x79c   : > { %2226 = vmatpush1.bf16.msra.mxu1 %v2139_v34 }
 0x79d   : > { %2227 = vmatprep.subr.bf16.mxu1 %v3226_v1 }
 0x79f   : > { %1971 = vrot.lane.b32.xlu1 %v3194_v35, %s3233_s16  ;;  %1969 = vrot.lane.b32.xlu0 %v2940_v33, %s3233_s16 }
 0x7a3   : > { %2000 = vrot.lane.b32.xlu1 %v2940_v33, %s3230_s27  ;;  %1967 = vrot.lane.b32.xlu0 %v2939_v51, %s3233_s16 }
 0x7a7   : > { %1998 = vrot.lane.b32.xlu1 %v2939_v51, %s3230_s27  ;;  %2002 = vrot.lane.b32.xlu0 %v3195_v36, %s3230_s27 }
 0x7ab   : > { %2033 = vrot.lane.b32.xlu1 %v3196_v37, %s3235_s18  ;;  %2031 = vrot.lane.b32.xlu0 %v2940_v33, %s3235_s18 }
 0x7af   : > { %2062 = vrot.lane.b32.xlu1 %v2940_v33, %s3231_s28  ;;  %2029 = vrot.lane.b32.xlu0 %v2939_v51, %s3235_s18 }
 0x7b3   : > { %2060 = vrot.lane.b32.xlu1 %v2939_v51, %s3231_s28  ;;  %2064 = vrot.lane.b32.xlu0 %v3197_v39, %s3231_s28 }
 0x7b7   : > { %2095 = vrot.lane.b32.xlu1 %v3198_v40, %s3236_s19  ;;  %2093 = vrot.lane.b32.xlu0 %v2940_v33, %s3236_s19 }
 0x7bb   : > { %2124 = vrot.lane.b32.xlu1 %v2940_v33, %s3234_s17  ;;  %2091 = vrot.lane.b32.xlu0 %v2939_v51, %s3236_s19 }
 0x7bf   : > { %2122 = vrot.lane.b32.xlu1 %v2939_v51, %s3234_s17  ;;  %2126 = vrot.lane.b32.xlu0 %v3199_v59, %s3234_s17 }
 0x7c3   : > { %486 = vrot.lane.b32.xlu1 %v3215_v58, %s3228_s25  ;;  %2167 = vperm.xlu0 %3133, %v2164_v43  }
 0x7c7   : > { %488 = vrot.lane.b32.xlu1 %v3216_v44, %s3228_s25 }
 0x805   : > { %v1910_v45 = vpop.permute.xlu1 %1909  ;;  %v1908_v46 = vpop.permute.xlu0 %1907 }
 0x806   : > { %1918 = vst.msk [vmem:[#allocation3 + $0x28] sm:$0xff] %vm3893_vm13, %v1910_v45  ;;  %v1912_v47 = vsel %vm691_vm15, %v1908_v46, %v1910_v45 }
 0x807   : > { %1917 = vst [vmem:[#allocation3 + $0x20] sm:$0xff] %v1912_v47  ;;  %2186 = vmatprep.subr.bf16.mxu0 %v1912_v47 }
 0x809   : > { %v1939_v48 = vpop.permute.xlu1 %1938  ;;  %v1906_v49 = vpop.permute.xlu0 %1905 }
 0x80a   : > { %v1911_v50 = vsel %vm691_vm15, %v1906_v49, %v1908_v46 }
 0x80b   : > { %1916 = vst [vmem:[#allocation3 + $0x18] sm:$0xff] %v1911_v50  ;;  %2187 = vmatpush1.bf16.msra.mxu0 %v1911_v50 }
 0x80d   : > { %v1937_v52 = vpop.permute.xlu1 %1936  ;;  %v2142_v53 = vld [vmem:[#allocation3 + $0x28] sm:$0xff]  ;;  %v1941_v55 = vpop.permute.xlu0 %1940 }
 0x80e   : > { %v1942_v54 = vsel %vm717_vm12, %v1937_v52, %v1939_v48  ;;  %2228 = vmatpush1.bf16.msra.mxu1 %v2142_v53  ;;  %v1943_v57 = vsel %vm717_vm12, %v1939_v48, %v1941_v55  ;;  %1949 = vst.msk [vmem:[#allocation3 + $0x40] sm:$0xff] %vm3893_vm13, %v1941_v55 }
 0x80f   : > { %1947 = vst [vmem:[#allocation3 + $0x30] sm:$0xff] %v1942_v54  ;;  %2229 = vmatprep.subr.bf16.mxu1 %v3226_v1  ;;  %1948 = vst [vmem:[#allocation3 + $0x38] sm:$0xff] %v1943_v57  ;;  %2188 = vmatprep.subr.bf16.mxu0 %v1943_v57 }
 0x810   : > { %2189 = vmatpush1.bf16.msra.mxu0 %v1942_v54 }
 0x811   : > { %v1972_v60 = vpop.permute.xlu1 %1971  ;;  %v1970_v61 = vpop.permute.xlu0 %1969 }
 0x812   : > { %1980 = vst.msk [vmem:[#allocation3 + $0x58] sm:$0xff] %vm3893_vm13, %v1972_v60  ;;  %v1974_v62 = vsel %vm746_vm2, %v1970_v61, %v1972_v60 }
 0x813   : > { %1979 = vst [vmem:[#allocation3 + $0x50] sm:$0xff] %v1974_v62  ;;  %2190 = vmatprep.subr.bf16.mxu0 %v1974_v62 }
 0x815   : > { %v2001_v63 = vpop.permute.xlu1 %2000  ;;  %v1968_v2 = vpop.permute.xlu0 %1967  ;;  %v2145_v3 = vld [vmem:[#allocation3 + $0x40] sm:$0xff] }
 0x816   : > { %v1973_v4 = vsel %vm746_vm2, %v1968_v2, %v1970_v61  ;;  %2230 = vmatpush1.bf16.msra.mxu1 %v2145_v3 }
 0x817   : > { %1978 = vst [vmem:[#allocation3 + $0x48] sm:$0xff] %v1973_v4  ;;  %2231 = vmatprep.subr.bf16.mxu1 %v3226_v1  ;;  %2191 = vmatpush1.bf16.msra.mxu0 %v1973_v4 }
 0x819   : > { %v1999_v5 = vpop.permute.xlu1 %1998  ;;  %v2148_v6 = vld [vmem:[#allocation3 + $0x58] sm:$0xff]  ;;  %v2003_v8 = vpop.permute.xlu0 %2002 }
 0x81a   : > { %v2004_v7 = vsel %vm3907_vm4, %v1999_v5, %v2001_v63  ;;  %v2005_v9 = vsel %vm3908_vm10, %v2001_v63, %v2003_v8  ;;  %2011 = vst.msk [vmem:[#allocation3 + $0x70] sm:$0xff] %vm3893_vm13, %v2003_v8  ;;  %2232 = vmatpush1.bf16.msra.mxu1 %v2148_v6  ;;  %vm496_vm4 = vcmask 1043608   ;;  %vm497_vm10 = vcmask 1047556  }
 0x81b   : > { %2009 = vst [vmem:[#allocation3 + $0x60] sm:$0xff] %v2004_v7  ;;  %2010 = vst [vmem:[#allocation3 + $0x68] sm:$0xff] %v2005_v9  ;;  %2233 = vmatprep.subr.bf16.mxu1 %v3226_v1  ;;  %2192 = vmatprep.subr.bf16.mxu0 %v2005_v9 }
 0x81c   : > { %2193 = vmatpush1.bf16.msra.mxu0 %v2004_v7 }
 0x81d   : > { %v2034_v10 = vpop.permute.xlu1 %2033  ;;  %v2032_v11 = vpop.permute.xlu0 %2031 }
 0x81e   : > { %2042 = vst.msk [vmem:[#allocation3 + $0x88] sm:$0xff] %vm3893_vm13, %v2034_v10  ;;  %v2036_v12 = vsel %vm800_vm5, %v2032_v11, %v2034_v10 }
 0x81f   : > { %2041 = vst [vmem:[#allocation3 + $0x80] sm:$0xff] %v2036_v12  ;;  %2194 = vmatprep.subr.bf16.mxu0 %v2036_v12 }
 0x821   : > { %v2063_v13 = vpop.permute.xlu1 %2062  ;;  %v2030_v14 = vpop.permute.xlu0 %2029  ;;  %v2151_v15 = vld [vmem:[#allocation3 + $0x70] sm:$0xff] }
 0x822   : > { %v2035_v16 = vsel %vm800_vm5, %v2030_v14, %v2032_v11  ;;  %2234 = vmatpush1.bf16.msra.mxu1 %v2151_v15 }
 0x823   : > { %2040 = vst [vmem:[#allocation3 + $0x78] sm:$0xff] %v2035_v16  ;;  %2235 = vmatprep.subr.bf16.mxu1 %v3226_v1  ;;  %2195 = vmatpush1.bf16.msra.mxu0 %v2035_v16 }
 0x825   : > { %v2061_v17 = vpop.permute.xlu1 %2060  ;;  %v2154_v20 = vld [vmem:[#allocation3 + $0x88] sm:$0xff]  ;;  %v2065_v23 = vpop.permute.xlu0 %2064 }
 0x826   : > { %v2066_v21 = vsel %vm825_vm14, %v2061_v17, %v2063_v13  ;;  %v2067_v24 = vsel %vm825_vm14, %v2063_v13, %v2065_v23  ;;  %2073 = vst.msk [vmem:[#allocation3 + $0xa0] sm:$0xff] %vm3893_vm13, %v2065_v23  ;;  %2236 = vmatpush1.bf16.msra.mxu1 %v2154_v20 }
 0x827   : > { %2071 = vst [vmem:[#allocation3 + $0x90] sm:$0xff] %v2066_v21  ;;  %2072 = vst [vmem:[#allocation3 + $0x98] sm:$0xff] %v2067_v24  ;;  %2237 = vmatprep.subr.bf16.mxu1 %v3226_v1  ;;  %2196 = vmatprep.subr.bf16.mxu0 %v2067_v24 }
 0x828   : > { %2197 = vmatpush1.bf16.msra.mxu0 %v2066_v21 }
 0x829   : > { %v2096_v25 = vpop.permute.xlu1 %2095  ;;  %v2094_v26 = vpop.permute.xlu0 %2093 }
 0x82a   : > { %2104 = vst.msk [vmem:[#allocation3 + $0xb8] sm:$0xff] %vm3893_vm13, %v2096_v25  ;;  %v2098_v27 = vsel %vm3895_vm6, %v2094_v26, %v2096_v25 }
 0x82b   : > { %2198 = vmatprep.subr.bf16.mxu0 %v2098_v27 }
 0x82d   : > { %v2125_v28 = vpop.permute.xlu1 %2124  ;;  %v2092_v29 = vpop.permute.xlu0 %2091  ;;  %v2157_v30 = vld [vmem:[#allocation3 + $0xa0] sm:$0xff] }
 0x82e   : > { %v2097_v31 = vsel %vm3895_vm6, %v2092_v29, %v2094_v26  ;;  %2238 = vmatpush1.bf16.msra.mxu1 %v2157_v30  ;;  %vm473_vm6 = vcmask 148480  }
 0x82f   : > { %2239 = vmatprep.subr.bf16.mxu1 %v3226_v1  ;;  %2199 = vmatpush1.bf16.msra.mxu0 %v2097_v31  ;;  %474 = vst.msk [vmem:[#allocation2 + $0x24] sm:$0x3] %vm473_vm6, %v3226_v1  ;;  %vm3909_vm6 = vcmask 261124  }
 0x831   : > { %v2123_v32 = vpop.permute.xlu1 %2122  ;;  %v2160_v33 = vld [vmem:[#allocation3 + $0xb8] sm:$0xff]  ;;  %v2127_v34 = vpop.permute.xlu0 %2126 }
 0x832   : > { %v2128_v51 = vsel %vm3894_vm11, %v2123_v32, %v2125_v28  ;;  %v2129_v56 = vsel %vm3894_vm11, %v2125_v28, %v2127_v34  ;;  %2135 = vst.msk [vmem:[#allocation3 + $0xd0] sm:$0xff] %vm3893_vm13, %v2127_v34  ;;  %2240 = vmatpush1.bf16.msra.mxu1 %v2160_v33  ;;  %vm498_vm13 = vmor %vm497_vm10, %vm496_vm4  ;;  %vm500_vm11 = vcmask 412672   ;;  %vm3915_vm10 = vcmask 261126  }
 0x833   : > { %2241 = vmatprep.subr.bf16.mxu1 %v3226_v1  ;;  %2200 = vmatprep.subr.bf16.mxu0 %v2129_v56 }
 0x834   : > { %2201 = vmatpush1.bf16.msra.mxu0 %v2128_v51 }
 0x835   : > { %v487_v36 = vpop.permute.xlu1 %486 }
 0x836   : > { %v490_v37 = vrot.slane %v487_v36, 4 }
 0x837   : > { %2217 = vmatmul.mubr.bf16.vlgmr.msra.gmra.mrb[16].mxu0 %v3692_v41 }
 0x838   : > { %2700 = vmatprep.mubr.bf16.mxu0 %v3226_v1  ;;  %v492_v39 = vsel %vm491_vm7, %v490_v37, %v487_v36 }
 0x839   : > { %v2163_v35 = vld [vmem:[#allocation3 + $0xd0] sm:$0xff]  ;;  %499 = vst.msk [vmem:[#allocation2 + $0x18] sm:$0xff] %vm498_vm13, %v492_v39  ;;  %v489_v40 = vpop.permute.xlu1 %488  ;;  %vm3913_vm13 = vcmask 891904  }
 0x83a   : > { %2242 = vmatpush1.bf16.msra.mxu1 %v2163_v35  ;;  %v493_v42 = vsel %vm491_vm7, %v490_v37, %v489_v40  ;;  %vm3914_vm4 = vmmov %vm3913_vm13 }
 0x83b   : > { %3093 = vmatprep.subr.bf16.mxu1 %v3225_v0  ;;  %501 = vst.msk [vmem:[#allocation2 + $0x20] sm:$0xf] %vm500_vm11, %v493_v42  ;;  %vm3910_vm11 = vcmask 410624  }
 0x83d   : > { %2258 = vmatmul.mubr.bf16.vlgmr.msra.gmra.mrb[16].mxu1 %v3692_v41 }
 0x83e   : > { %3107 = vmatprep.mubr.msk.bf16.mxu1 %vm3900_vm9, %v3225_v0  ;;  %vm479_vm9 = vcmask 566680  }
 0x83f   : > { %480 = vst.msk [vmem:[#allocation2 + $0x2c] sm:$0x3] %vm479_vm9, %v3226_v1  ;;  %vm3922_vm9 = vcmask 1045504  }
 0x840   : > { %v3746_v41 = vld [vmem:[#allocation2 + $0x18] sm:$0xff] }
 0x841   : > { %v2975_v43 = vcombine.high %v3746_v41, %v3746_v41  ;;  %v2974_v58 = vcombine.low %v3746_v41, %v3746_v41 }
 0x842   : > { %v3200_v59 = vld [vmem:[#allocation2 + $0x20] ss:$0 sps:$4 sm:$0xff]   ;;  %v2168_v44 = vpop.permute.xlu0 %2167 }
 0x843   : > { %2377 = vrot.lane.b32.xlu1 %v3200_v59, %s3229_s26  ;;  %v2294_v21 = vld [vmem:[#allocation2 + $0x20] sm:$0xf] }
 0x847   : > { %2525 = vrot.lane.b32.xlu1 %v2975_v43, %s3231_s28 }
 0x84b   : > { %2523 = vrot.lane.b32.xlu1 %v2974_v58, %s3231_s28 }
 0x90a   : > { %v2218_v45 = vpop.f32.mrb[16].mxu0 }
 0x90b   : > { %v2219_v46 = vadd.f32 %v2218_v45, %v2168_v44  ;;  %v2220_v47 = vpop.f32.mrb[17].mxu0 }
 0x90c   : > { %v2221_v48 = vadd.f32 %v2220_v47, %v2168_v44  ;;  %v2222_v49 = vpop.f32.mrb[18].mxu0 }
 0x90d   : > { %v2265_v50 = vmax.f32 %v2219_v46, 0.0  ;;  %v2223_v52 = vpop.f32.mrb[19].mxu0 }
 0x90e   : > { %v2266_v53 = vmax.f32 %v2221_v48, 0.0 }
 0x90f   : > { %v2268_v54 = vmul.f32 %v2265_v50, %v3358_v18  ;;  %v3201_v18 = vld [vmem:[#allocation2 + $0x20] ss:$0 sps:$4 sm:$0xff]  }
 0x910   : > { %v2259_v55 = vpop.f32.mrb[16].mxu1  ;;  %v2269_v57 = vmul.f32 %v2266_v53, %v3362_v22  ;;  %v2378_v22 = vpop.permute.xlu1 %2377 }
 0x911   : > { %v2260_v60 = vadd.f32 %v2259_v55, %v2168_v44  ;;  %v2261_v61 = vpop.f32.mrb[17].mxu1  ;;  %2397 = vst.msk [vmem:[#allocation3 + $0x28] sm:$0xf0] %vm3909_vm6, %v2378_v22 }
 0x912   : > { %v3015_v62 = vpack.c.bf16 %v2269_v57, %v2268_v54  ;;  %v2262_v63 = vpop.f32.mrb[18].mxu1 }
 0x913   : > { %v2267_v2 = vmax.f32 %v2260_v60, 0.0  ;;  %v2263_v3 = vpop.f32.mrb[19].mxu1 }
 0x914   : > { %2282 = vrot.lane.b32.xlu0 %v3015_v62, %s3228_s25  ;;  %v2526_v6 = vpop.permute.xlu1 %2525 }
 0x915   : > { %v2270_v4 = vmul.f32 %v2267_v2, %v3360_v19 }
 0x917   : > { %v3016_v5 = vpack.c.bf16 %v2270_v4, %v2270_v4 }
 0x918   : > { %v2524_v7 = vpop.permute.xlu1 %2523 }
 0x919   : > { %2284 = vrot.lane.b32.xlu0 %v3016_v5, %s3228_s25  ;;  %v2535_v8 = vsel %vm825_vm14, %v2524_v7, %v2526_v6 }
 0x91a   : > { %2545 = vst [vmem:[#allocation3 + $0x60] sm:$0xf0] %v2535_v8  ;;  %v2639_v8 = vld [vmem:[%s3882_s13] sm:$0xff] }
 0x91d   : > { %2375 = vrot.lane.b32.xlu0 %v2975_v43, %s3229_s26 }
 0x921   : > { %2373 = vrot.lane.b32.xlu0 %v2974_v58, %s3229_s26 }
 0x925   : > { %2527 = vrot.lane.b32.xlu0 %v3201_v18, %s3231_s28 }
 0x986   : > { %v2283_v19 = vpop.permute.xlu0 %2282 }
 0x987   : > { %v2286_v1 = vrot.slane %v2283_v19, 4 }
 0x989   : > { %v2287_v9 = vsel %vm491_vm7, %v2286_v1, %v2283_v19  ;;  %v2640_v19 = vld [vmem:[%s3882_s13 + $0x8] sm:$0xff] }
 0x98a   : > { %2291 = vst.msk [vmem:[#allocation2 + $0x24] sm:$0x33] %vm3369_vm8, %v2287_v9  ;;  %vm3912_vm8 = vcmask 254976  }
 0x98b   : > { %v2285_v10 = vpop.permute.xlu0 %2284 }
 0x98c   : > { %v2288_v11 = vsel %vm491_vm7, %v2286_v1, %v2285_v10  ;;  %vm3911_vm7 = vmmov %vm3909_vm6 }
 0x98d   : > { %2292 = vst.msk [vmem:[#allocation2 + $0x2c] sm:$0x3] %vm3910_vm11, %v2288_v11 }
 0x98f   : > { %v2376_v12 = vpop.permute.xlu0 %2375 }
 0x990   : > { %v2386_v13 = vsel %vm717_vm12, %v2376_v12, %v2378_v22 }
 0x991   : > { %v2295_v14 = vld [vmem:[#allocation2 + $0x24] sm:$0x33]  ;;  %2396 = vst [vmem:[#allocation3 + $0x20] sm:$0xf0] %v2386_v13 }
 0x992   : > { %v2355_v15 = vld [vmem:[#allocation2 + $0x24] sm:$0x33]  ;;  %v2968_v16 = vcombine.low %v3746_v41, %v2295_v14  ;;  %v2969_v17 = vcombine.high %v3746_v41, %v2295_v14 }
 0x993   : > { %v2978_v20 = vcombine.high %v2355_v15, %v2355_v15  ;;  %v2374_v23 = vpop.permute.xlu0 %2373  ;;  %v2977_v26 = vcombine.low %v2355_v15, %v2355_v15  ;;  %v2437_v27 = vld [vmem:[#allocation2 + $0x24] sm:$0x33] }
 0x994   : > { %2313 = vst [vmem:[#allocation3] sm:$0x3f] %v2968_v16  ;;  %2314 = vst [vmem:[#allocation3 + $0x8] sm:$0x3f] %v2969_v17  ;;  %v2296_v38 = vld [vmem:[#allocation2 + $0x2c] sm:$0x3]  ;;  %v2385_v28 = vsel %vm717_vm12, %v2374_v23, %v2376_v12  ;;  %v2984_v32 = vcombine.high %v3746_v41, %v2437_v27  ;;  %v2983_v35 = vcombine.low %v3746_v41, %v2437_v27 }
 0x995   : > { %2381 = vrot.lane.b32.xlu1 %v2978_v20, %s3229_s26  ;;  %v2970_v24 = vcombine.low %v2294_v21, %v2296_v38  ;;  %v3203_v25 = vld [vmem:[#allocation2 + $0x2c] ss:$0 sps:$4 sm:$0x33]   ;;  %2395 = vst [vmem:[#allocation3 + $0x18] sm:$0xf0] %v2385_v28 }
 0x996   : > { %2383 = vrot.lane.b32.xlu0 %v3203_v25, %s3229_s26  ;;  %v3205_v31 = vld [vmem:[#allocation2 + $0x20] ss:$12 sps:$4 sm:$0x3f]   ;;  %v2505_v33 = vld [vmem:[#allocation2 + $0x24] sm:$0x33] }
 0x997   : > { %2315 = vst.msk [vmem:[#allocation3 + $0x10] sm:$0x3f] %vm1408_vm3, %v2970_v24  ;;  %v2528_v29 = vpop.permute.xlu0 %2527  ;;  %v2318_v51 = vld [vmem:[#allocation2 + $0x24] sm:$0x33]  ;;  %v2993_v34 = vcombine.high %v2505_v33, %v2505_v33  ;;  %v2992_v42 = vcombine.low %v2505_v33, %v2505_v33 }
 0x998   : > { %v2536_v30 = vsel %vm825_vm14, %v2526_v6, %v2528_v29  ;;  %2547 = vst.msk [vmem:[#allocation3 + $0x70] sm:$0xf0] %vm3911_vm7, %v2528_v29  ;;  %v3207_v56 = vld [vmem:[#allocation2 + $0x20] ss:$12 sps:$4 sm:$0x3f]   ;;  %v2972_v36 = vcombine.high %v3746_v41, %v2318_v51  ;;  %v2971_v40 = vcombine.low %v3746_v41, %v2318_v51 }
 0x999   : > { %2379 = vrot.lane.b32.xlu1 %v2977_v26, %s3229_s26  ;;  %2546 = vst [vmem:[#allocation3 + $0x68] sm:$0xf0] %v2536_v30  ;;  %v2335_v37 = vrot.slane %v3207_v56, 2  ;;  %v3209_v59 = vld [vmem:[#allocation2 + $0x20] ss:$12 sps:$4 sm:$0x3f]  }
 0x99a   : > { %2456 = vrot.lane.b32.xlu0 %v3205_v31, %s3230_s27  ;;  %v2334_v39 = vrot.slane %v2972_v36, 2  ;;  %v2333_v43 = vrot.slane %v2971_v40, 2  ;;  %v2403_v58 = vld [vmem:[#allocation2 + $0x24] sm:$0x33]  ;;  %v2420_v44 = vrot.slane %v3209_v59, 6 }
 0x99b   : > { %v2980_v45 = vcombine.low %v3746_v41, %v2403_v58  ;;  %v3210_v46 = vld [vmem:[#allocation2 + $0x2c] ss:$0 sps:$4 sm:$0x33]   ;;  %v2981_v47 = vcombine.high %v3746_v41, %v2403_v58  ;;  %v2468_v48 = vld [vmem:[#allocation2 + $0x24] sm:$0x33] }
 0x99c   : > { %v3211_v50 = vld [vmem:[#allocation2 + $0x20] ss:$12 sps:$4 sm:$0x3f]   ;;  %v2987_v53 = vcombine.high %v3746_v41, %v2468_v48  ;;  %v2986_v55 = vcombine.low %v3746_v41, %v2468_v48  ;;  %v2553_v61 = vld [vmem:[#allocation2 + $0x24] sm:$0x33] }
 0x99d   : > { %2454 = vrot.lane.b32.xlu1 %v2984_v32, %s3230_s27  ;;  %v2418_v49 = vrot.slane %v2980_v45, 6  ;;  %v2419_v52 = vrot.slane %v2981_v47, 6  ;;  %v2485_v54 = vrot.slane %v3211_v50, 2  ;;  %v3212_v60 = vld [vmem:[#allocation2 + $0x20] ss:$12 sps:$4 sm:$0x3f]   ;;  %v2995_v3 = vcombine.low %v3746_v41, %v2553_v61 }
 0x99e   : > { %2531 = vrot.lane.b32.xlu0 %v2993_v34, %s3231_s28  ;;  %v2484_v57 = vrot.slane %v2987_v53, 2  ;;  %v2483_v62 = vrot.slane %v2986_v55, 2  ;;  %v2570_v63 = vrot.slane %v3212_v60, 6  ;;  %v2587_v2 = vld [vmem:[#allocation2 + $0x24] sm:$0x33]  ;;  %v2996_v5 = vcombine.high %v3746_v41, %v2553_v61 }
 0x99f   : > { %v2998_v4 = vcombine.low %v3746_v41, %v2587_v2  ;;  %v2568_v18 = vrot.slane %v2995_v3, 6  ;;  %v2999_v6 = vcombine.high %v3746_v41, %v2587_v2  ;;  %v3213_v7 = vld [vmem:[#allocation2 + $0x20] ss:$12 sps:$4 sm:$0x3f]  }
 0x9a0   : > { %v2569_v22 = vrot.slane %v2996_v5, 6 }
 0x9a1   : > { %2452 = vrot.lane.b32.xlu1 %v2983_v35, %s3230_s27 }
 0x9a2   : > { %2340 = vrot.lane.b32.xlu0 %v2335_v37, %s3232_s15 }
 0x9a5   : > { %2338 = vrot.lane.b32.xlu1 %v2334_v39, %s3232_s15 }
 0x9a6   : > { %2529 = vrot.lane.b32.xlu0 %v2992_v42, %s3231_s28 }
 0x9a9   : > { %2336 = vrot.lane.b32.xlu1 %v2333_v43, %s3232_s15 }
 0x9aa   : > { %2425 = vrot.lane.b32.xlu0 %v2420_v44, %s3233_s16 }
 0x9ad   : > { %2533 = vrot.lane.b32.xlu1 %v3210_v46, %s3231_s28 }
 0x9ae   : > { %2421 = vrot.lane.b32.xlu0 %v2418_v49, %s3233_s16 }
 0x9b1   : > { %2423 = vrot.lane.b32.xlu1 %v2419_v52, %s3233_s16  ;;  %s3112_s16 = smul.u32 48, %s3928_s30 }
 0x9b2   : > { %2490 = vrot.lane.b32.xlu0 %v2485_v54, %s3235_s18 }
 0x9b5   : > { %2488 = vrot.lane.b32.xlu1 %v2484_v57, %s3235_s18 }
 0x9b6   : > { %2486 = vrot.lane.b32.xlu0 %v2483_v62, %s3235_s18 }
 0x9b9   : > { %2575 = vrot.lane.b32.xlu1 %v2570_v63, %s3236_s19 }
 0x9ba   : > { %2602 = vrot.lane.b32.xlu0 %v2998_v4, %s3234_s17 }
 0x9bd   : > { %2571 = vrot.lane.b32.xlu1 %v2568_v18, %s3236_s19 }
 0x9be   : > { %2573 = vrot.lane.b32.xlu0 %v2569_v22, %s3236_s19  ;;  %s467_s19 = scalar_lea.vmem %s3883_s14, %s3112_s16 }
 0x9c1   : > { %2604 = vrot.lane.b32.xlu1 %v2999_v6, %s3234_s17 }
 0x9c2   : > { %2606 = vrot.lane.b32.xlu0 %v3213_v7, %s3234_s17 }
 0x9c5   : > { %2643 = vperm.xlu1 %3134, %v2639_v8  }
 0x9c6   : > { %2648 = vperm.xlu0 %3133, %v2640_v19   ;;  %v3214_v19 = vld [vmem:[%s3881_s12] sm:$0xff]  }
 0xa07   : > { %v2382_v1 = vpop.permute.xlu1 %2381 }
 0xa08   : > { %v2384_v9 = vpop.permute.xlu0 %2383 }
 0xa09   : > { %v2388_v41 = vsel %vm717_vm12, %v2382_v1, %v2384_v9  ;;  %2400 = vst.msk [vmem:[#allocation3 + $0x40] sm:$0x3] %vm3912_vm8, %v2384_v9 }
 0xa0a   : > { %2399 = vst [vmem:[#allocation3 + $0x38] sm:$0x3] %v2388_v41 }
 0xa0b   : > { %v2380_v10 = vpop.permute.xlu1 %2379 }
 0xa0c   : > { %v2387_v11 = vsel %vm717_vm12, %v2380_v10, %v2382_v1  ;;  %v2457_v12 = vpop.permute.xlu0 %2456  ;;  %vm3916_vm12 = vmmov %vm3912_vm8 }
 0xa0d   : > { %2398 = vst [vmem:[#allocation3 + $0x30] sm:$0x3] %v2387_v11  ;;  %2465 = vst.msk [vmem:[#allocation3 + $0x58] sm:$0x3f] %vm1408_vm3, %v2457_v12 }
 0xa0f   : > { %v2455_v13 = vpop.permute.xlu1 %2454 }
 0xa10   : > { %v2459_v14 = vsel %vm3913_vm13, %v2455_v13, %v2457_v12  ;;  %v2532_v15 = vpop.permute.xlu0 %2531 }
 0xa11   : > { %2464 = vst [vmem:[#allocation3 + $0x50] sm:$0x3f] %v2459_v14 }
 0xa13   : > { %v2453_v16 = vpop.permute.xlu1 %2452 }
 0xa14   : > { %v2458_v17 = vsel %vm3914_vm4, %v2453_v16, %v2455_v13  ;;  %v2341_v20 = vpop.permute.xlu0 %2340 }
 0xa15   : > { %2463 = vst [vmem:[#allocation3 + $0x48] sm:$0x3f] %v2458_v17  ;;  %2349 = vst.msk [vmem:[#allocation3 + $0x10] sm:$0xc0] %vm3915_vm10, %v2341_v20 }
 0xa16   : > { %2352 = vst.msk [vmem:[#allocation3 + $0x28] sm:$0xf] %vm1047_vm0, %v2341_v20 }
 0xa17   : > { %v2339_v21 = vpop.permute.xlu1 %2338 }
 0xa18   : > { %v2343_v23 = vsel %vm691_vm15, %v2339_v21, %v2341_v20  ;;  %v2530_v38 = vpop.permute.xlu0 %2529 }
 0xa19   : > { %2348 = vst [vmem:[#allocation3 + $0x20] ss:$-20 sps:$4 sm:$0xcf] %v2343_v23   ;;  %v2537_v24 = vsel %vm825_vm14, %v2530_v38, %v2532_v15 }
 0xa1a   : > { %2548 = vst [vmem:[#allocation3 + $0x78] sm:$0x3] %v2537_v24 }
 0xa1b   : > { %v2337_v25 = vpop.permute.xlu1 %2336 }
 0xa1c   : > { %v2342_v26 = vsel %vm691_vm15, %v2337_v25, %v2339_v21  ;;  %v2426_v27 = vpop.permute.xlu0 %2425  ;;  %v2620_v28 = vld [vmem:[#allocation3 + $0x10] sm:$0xff] }
 0xa1d   : > { %2347 = vst [vmem:[#allocation3 + $0x18] ss:$-20 sps:$4 sm:$0xcf] %v2342_v26   ;;  %2434 = vst.msk [vmem:[#allocation3 + $0x40] sm:$0xfc] %vm1528_vm1, %v2426_v27  ;;  %3094 = vmatpush3.bf16.msra.mxu1 %v2620_v28  ;;  %v2623_v33 = vld [vmem:[#allocation3 + $0x28] sm:$0xff] }
 0xa1e   : > { %3095 = vmatprep.subr.bf16.mxu1 %v3225_v0 }
 0xa1f   : > { %v2534_v29 = vpop.permute.xlu1 %2533 }
 0xa20   : > { %v2538_v30 = vsel %vm825_vm14, %v2532_v15, %v2534_v29  ;;  %2550 = vst.msk [vmem:[#allocation3 + $0x88] sm:$0x3] %vm3916_vm12, %v2534_v29  ;;  %v2619_v31 = vld [vmem:[#allocation3 + $0x8] sm:$0xff]  ;;  %v2422_v32 = vpop.permute.xlu0 %2421  ;;  %v2622_v36 = vld [vmem:[#allocation3 + $0x20] sm:$0xff]  ;;  %vm3917_vm14 = vmmov %vm3915_vm10 }
 0xa21   : > { %2549 = vst [vmem:[#allocation3 + $0x80] sm:$0x3] %v2538_v30  ;;  %2668 = vmatprep.subr.bf16.mxu0 %v2619_v31  ;;  %3096 = vmatpush3.bf16.msra.mxu1 %v2623_v33 }
 0xa22   : > { %3097 = vmatprep.subr.bf16.mxu1 %v3225_v0 }
 0xa23   : > { %v2424_v51 = vpop.permute.xlu1 %2423 }
 0xa24   : > { %v2427_v34 = vsel %vm746_vm2, %v2422_v32, %v2424_v51  ;;  %v2428_v56 = vsel %vm746_vm2, %v2424_v51, %v2426_v27  ;;  %v2618_v35 = vld [vmem:[#allocation3] sm:$0xff]  ;;  %v2491_v37 = vpop.permute.xlu0 %2490  ;;  %v2621_v59 = vld [vmem:[#allocation3 + $0x18] sm:$0xff]  ;;  %vm3920_vm2 = vcmask 736256  }
 0xa25   : > { %2432 = vst [vmem:[#allocation3 + $0x30] sm:$0xfc] %v2427_v34  ;;  %2433 = vst [vmem:[#allocation3 + $0x38] sm:$0xfc] %v2428_v56  ;;  %2669 = vmatpush1.bf16.msra.mxu0 %v2618_v35  ;;  %v2626_v39 = vld [vmem:[#allocation3 + $0x40] sm:$0xff] }
 0xa26   : > { %2670 = vmatprep.subr.bf16.mxu0 %v2622_v36  ;;  %2499 = vst.msk [vmem:[#allocation3 + $0x58] sm:$0xc0] %vm3917_vm14, %v2491_v37  ;;  %3098 = vmatpush3.bf16.msra.mxu1 %v2626_v39 }
 0xa27   : > { %2502 = vst.msk [vmem:[#allocation3 + $0x70] sm:$0xf] %vm1047_vm0, %v2491_v37  ;;  %v2489_v40 = vpop.permute.xlu1 %2488  ;;  %3099 = vmatprep.subr.bf16.mxu1 %v3225_v0  ;;  %vm3918_vm0 = vcmask 744448  }
 0xa28   : > { %v2493_v42 = vsel %vm800_vm5, %v2489_v40, %v2491_v37  ;;  %v2487_v43 = vpop.permute.xlu0 %2486  ;;  %vm3919_vm15 = vmmov %vm3918_vm0 }
 0xa29   : > { %2498 = vst [vmem:[#allocation3 + $0x68] ss:$-20 sps:$4 sm:$0xcf] %v2493_v42   ;;  %2671 = vmatpush1.bf16.msra.mxu0 %v2621_v59  ;;  %v2492_v58 = vsel %vm800_vm5, %v2487_v43, %v2489_v40 }
 0xa2a   : > { %2497 = vst [vmem:[#allocation3 + $0x60] ss:$-20 sps:$4 sm:$0xcf] %v2492_v58  }
 0xa2b   : > { %v2576_v44 = vpop.permute.xlu1 %2575 }
 0xa2c   : > { %2584 = vst.msk [vmem:[#allocation3 + $0x88] sm:$0xfc] %vm1528_vm1, %v2576_v44  ;;  %v2625_v45 = vld [vmem:[#allocation3 + $0x38] sm:$0xff]  ;;  %v2624_v46 = vld [vmem:[#allocation3 + $0x30] sm:$0xff]  ;;  %v2603_v47 = vpop.permute.xlu0 %2602  ;;  %vm3921_vm1 = vmmov %vm3920_vm2 }
 0xa2d   : > { %2672 = vmatprep.subr.bf16.mxu0 %v2625_v45  ;;  %v2629_v48 = vld [vmem:[#allocation3 + $0x58] sm:$0xff] }
 0xa2e   : > { %2673 = vmatpush1.bf16.msra.mxu0 %v2624_v46  ;;  %3100 = vmatpush3.bf16.msra.mxu1 %v2629_v48  ;;  %v2632_v53 = vld [vmem:[#allocation3 + $0x70] sm:$0xff] }
 0xa2f   : > { %v2572_v49 = vpop.permute.xlu1 %2571  ;;  %3101 = vmatprep.subr.bf16.mxu1 %v3225_v0 }
 0xa30   : > { %v2628_v50 = vld [vmem:[#allocation3 + $0x50] sm:$0xff]  ;;  %v2574_v52 = vpop.permute.xlu0 %2573  ;;  %v2631_v62 = vld [vmem:[#allocation3 + $0x68] sm:$0xff] }
 0xa31   : > { %2674 = vmatprep.subr.bf16.mxu0 %v2628_v50  ;;  %v2577_v54 = vsel %vm3918_vm0, %v2572_v49, %v2574_v52  ;;  %v2578_v55 = vsel %vm3919_vm15, %v2574_v52, %v2576_v44  ;;  %v2627_v60 = vld [vmem:[#allocation3 + $0x48] sm:$0xff]  ;;  %v2630_v4 = vld [vmem:[#allocation3 + $0x60] sm:$0xff] }
 0xa32   : > { %3102 = vmatpush3.bf16.msra.mxu1 %v2632_v53  ;;  %2582 = vst [vmem:[#allocation3 + $0x78] sm:$0xfc] %v2577_v54  ;;  %2583 = vst [vmem:[#allocation3 + $0x80] sm:$0xfc] %v2578_v55  ;;  %2675 = vmatpush1.bf16.msra.mxu0 %v2627_v60 }
 0xa33   : > { %v2605_v57 = vpop.permute.xlu1 %2604  ;;  %3103 = vmatprep.subr.bf16.mxu1 %v3225_v0  ;;  %2676 = vmatprep.subr.bf16.mxu0 %v2631_v62  ;;  %v2635_v2 = vld [vmem:[#allocation3 + $0x88] sm:$0xff] }
 0xa34   : > { %v2608_v61 = vsel %vm3920_vm2, %v2603_v47, %v2605_v57  ;;  %v2607_v63 = vpop.permute.xlu0 %2606 }
 0xa35   : > { %2613 = vst [vmem:[#allocation3 + $0x90] sm:$0x3f] %v2608_v61  ;;  %v2609_v3 = vsel %vm3921_vm1, %v2605_v57, %v2607_v63  ;;  %2615 = vst.msk [vmem:[#allocation3 + $0xa0] sm:$0x3f] %vm1408_vm3, %v2607_v63 }
 0xa36   : > { %3104 = vmatpush3.bf16.msra.mxu1 %v2635_v2  ;;  %2614 = vst [vmem:[#allocation3 + $0x98] sm:$0x3f] %v2609_v3  ;;  %2677 = vmatpush1.bf16.msra.mxu0 %v2630_v4  ;;  %vm3923_vm3 = vmmov %vm3922_vm9 }
 0xa37   : > { %3105 = vmatprep.subr.bf16.mxu1 %v3225_v0  ;;  %vm3924_vm6 = vmmov %vm3923_vm3 }
 0xa39   : > { %v2634_v5 = vld [vmem:[#allocation3 + $0x80] sm:$0xff]  ;;  %v2633_v18 = vld [vmem:[#allocation3 + $0x78] sm:$0xff] }
 0xa3a   : > { %2678 = vmatprep.subr.bf16.mxu0 %v2634_v5 }
 0xa3b   : > { %2679 = vmatpush1.bf16.msra.mxu0 %v2633_v18 }
 0xa3c   : > { %v2636_v22 = vld [vmem:[#allocation3 + $0x90] sm:$0x3f]  ;;  %v2638_v6 = vld [vmem:[#allocation3 + $0xa0] sm:$0x3f] }
 0xa3d   : > { %v2637_v7 = vld [vmem:[#allocation3 + $0x98] sm:$0x3f]  ;;  %v2666_v8 = vsel %vm3922_vm9, %v2638_v6, 0  ;;  %v2660_v1 = vsel %vm3924_vm6, %v2636_v22, 0 }
 0xa3e   : > { %3002 = vmatprep.subr.msk.bf16.mxu0 %vm3923_vm3, %v2637_v7  ;;  %3106 = vmatpush3.bf16.msra.mxu1 %v2666_v8 }
 0xa3f   : > { %2681 = vmatpush1.bf16.msra.mxu0 %v2660_v1 }
 0xa41   : > { %3108 = vmatmul.mubr.msk.bf16.vlgmr.msra.gmra.mrb[20].mxu1 %vm800_vm5, %v3214_v19 }
 0xa42   : > { %3003 = vmatmul.mubr.msk.bf16.vlgmr.msra.gmra.mrb[20].mxu0 %vm800_vm5, %v3214_v19  ;;  %vm3925_vm5 = vcmask 261120  }
 0xa43   : > { %vm3926_vm11 = vmmov %vm3925_vm5 }
 0xa44   : > { %v2644_v0 = vpop.permute.xlu1 %2643 }
 0xa45   : > { %v2649_v9 = vpop.permute.xlu0 %2648 }
 0xb14   : > { %v2745_v41 = vpop.f32.mrb[20].mxu1 }
 0xb15   : > { %v2746_v10 = vadd.f32 %v2745_v41, %v2644_v0  ;;  %v2702_v11 = vpop.f32.mrb[20].mxu0  ;;  %v3109_v12 = vpop.f32.mrb[21].mxu1 }
 0xb16   : > { %v2703_v13 = vadd.f32 %v2702_v11, %v2644_v0  ;;  %v2704_v14 = vpop.f32.mrb[21].mxu0  ;;  %v2748_v15 = vpop.f32.mrb[22].mxu1 }
 0xb17   : > { %v2754_v16 = vmax.f32 %v2746_v10, 0.0  ;;  %v2705_v17 = vadd.f32 %v2704_v14, %v2644_v0  ;;  %v2749_v20 = vadd.f32 %v2748_v15, %v2649_v9  ;;  %v2706_v21 = vpop.f32.mrb[22].mxu0  ;;  %v3110_v23 = vpop.f32.mrb[23].mxu1 }
 0xb18   : > { %v2752_v38 = vmax.f32 %v2703_v13, 0.0  ;;  %v2707_v24 = vadd.f32 %v2706_v21, %v2649_v9  ;;  %v2708_v25 = vpop.f32.mrb[23].mxu0 }
 0xb19   : > { %2760 = vst.msk [vmem:[%s467_s19 + $0x10] sm:$0xff] %vm3925_vm5, %v2754_v16  ;;  %v2753_v26 = vmax.f32 %v2705_v17, 0.0  ;;  %v2757_v27 = vmax.f32 %v2749_v20, 0.0  ;;  %v2709_v28 = vadd.f32 %v2708_v25, %v2649_v9 }
 0xb1a   : > { %2758 = vst [vmem:[%s467_s19] sm:$0xff] %v2752_v38  ;;  %v2755_v29 = vmax.f32 %v2707_v24, 0.0 }
 0xb1b   : > { %2759 = vst [vmem:[%s467_s19 + $0x8] sm:$0xff] %v2753_v26  ;;  %2763 = vst.msk [vmem:[%s467_s19 + $0x28] sm:$0xff] %vm3926_vm11, %v2757_v27  ;;  %v2756_v30 = vmax.f32 %v2709_v28, 0.0 }
 0xb1c   : > { %2761 = vst [vmem:[%s467_s19 + $0x18] sm:$0xff] %v2755_v29 }
 0xb1d   : > { %2762 = vst [vmem:[%s467_s19 + $0x20] sm:$0xff] %v2756_v30 }
 0xb1e PF: > { %s24_s29 = sadd.s32 1, %s3223_s29  }
 0xb1f   : > { %p21_p4 = scmp.ge.s32.totalorder %s24_s29, 4  }
 0xb21   :  { %23 = sbr.rel (!%p21_p4) target bundleno = 1 (0x1), region = 106 }

</bundles_post_ra>
